<compile_context>
chip_gen: v6e
topology: v6e:2x2x1
jax: 0.10.0
libtpu: 0.0.40
codegen_flags: <defaults>
</compile_context>

<pallas_src>
import functools

import jax
import jax.numpy as jnp
from jax.experimental import pallas as pl
from jax.experimental.pallas import tpu as pltpu


def attention_block_kernel(
    xq_ref, xkv_ref, maskbias_ref,
    wq_ref, bq_ref, wk_ref, bk_ref, wv_ref, bv_ref, wo_ref, bo_ref,
    g1_ref, be1_ref,
    w1_ref, b1_ref, w2_ref, b2_ref,
    g2_ref, be2_ref,
    out_ref,
    k_scr, v_scr,
    *, n_head, eps=1e-5, use_approx_gelu=False,
):
    f32, bf16 = jnp.float32, jnp.bfloat16
    H = n_head

    x_q = xq_ref[0].astype(f32)                       # (tq, C) residual path, f32
    tq, C = x_q.shape
    c = C // H

    # --- K/V projections: once per batch element, reused across all query tiles. -----
    @pl.when(pl.program_id(1) == 0)
    def _():
        xkv = xkv_ref[0]                              # (T, C) bf16
        k = jnp.dot(xkv, wk_ref[...], preferred_element_type=f32) + bk_ref[...]
        v = jnp.dot(xkv, wv_ref[...], preferred_element_type=f32) + bv_ref[...]
        k_scr[...] = k.astype(bf16)
        v_scr[...] = v.astype(bf16)

    # --- Q projection: dense (tq, C) @ (C, C); softmax scale pre-folded into wq/bq. ---
    q2d = jnp.dot(x_q.astype(bf16), wq_ref[...], preferred_element_type=f32) + bq_ref[...]

    mask_bias = maskbias_ref[0]                       # (1, T) additive bias (-1e9 / 0)
    k_all = k_scr[...]                                # (T, C) bf16
    v_all = v_scr[...]                                # (T, C) bf16

    # --- Per-head attention on lane slices (peak temp = one (tq, T) score matrix). ----
    # TODO(synk): for very long T, add an inner K-tile loop with online softmax
    # (running max/sum) so the score tile is bounded by (tq, tk) instead of (tq, T).
    o_parts = []
    for h in range(H):
        lo = h * c
        q_h = q2d[:, lo:lo + c].astype(bf16)          # (tq, c)
        k_h = k_all[:, lo:lo + c]                     # (T,  c)
        v_h = v_all[:, lo:lo + c]                     # (T,  c)
        s = jnp.einsum('qd,kd->qk', q_h, k_h,
                       preferred_element_type=f32) + mask_bias            # (tq, T)
        m = jnp.max(s, axis=-1, keepdims=True)
        p = jnp.exp(s - m)
        l = jnp.sum(p, axis=-1, keepdims=True)
        o_h = jnp.dot(p.astype(bf16), v_h, preferred_element_type=f32)    # (tq, c)
        o_parts.append(o_h * pl.reciprocal(l, approx=True))
    o2d = jnp.concatenate(o_parts, axis=-1)           # (tq, C) == concat(heads)

    # --- Output projection: single dense (tq, C) @ (C, C). ----------------------------
    attn = jnp.dot(o2d.astype(bf16), wo_ref[...], preferred_element_type=f32) + bo_ref[...]

    # --- Add & Norm 1 (f32). -----------------------------------------------------------
    h1 = attn + x_q
    mu1 = jnp.mean(h1, axis=-1, keepdims=True)
    var1 = jnp.mean(jnp.square(h1 - mu1), axis=-1, keepdims=True)
    x1 = (h1 - mu1) * jax.lax.rsqrt(var1 + eps) * g1_ref[...] + be1_ref[...]

    # --- FFN: Linear -> GELU -> Linear. -------------------------------------------------
    # TODO(synk): for very large intermediate_size, tile the I dimension (inner grid axis
    # or emit_pipeline with an f32 accumulator) instead of holding w1/w2 fully resident
    # in VMEM (matters on v7x's 64 MiB VMEM).
    ff = jnp.dot(x1.astype(bf16), w1_ref[...], preferred_element_type=f32) + b1_ref[...]
    if use_approx_gelu:
        ff = jax.nn.gelu(ff, approximate=True)        # tanh path -> EUP (numerics differ)
    else:
        ff = 0.5 * ff * (1.0 + jax.lax.erf(ff * jnp.float32(0.7071067811865476)))
    ff = jnp.dot(ff.astype(bf16), w2_ref[...], preferred_element_type=f32) + b2_ref[...]

    # --- Add & Norm 2 (f32). -----------------------------------------------------------
    h2 = ff + x1
    mu2 = jnp.mean(h2, axis=-1, keepdims=True)
    var2 = jnp.mean(jnp.square(h2 - mu2), axis=-1, keepdims=True)
    out = (h2 - mu2) * jax.lax.rsqrt(var2 + eps) * g2_ref[...] + be2_ref[...]

    out_ref[0] = out.astype(out_ref.dtype)


def _choose_q_tile(T, max_tile=256):
    """Largest query tile <= max_tile dividing T; prefers multiples of 128, then 8."""
    if T <= max_tile:
        return T
    for step in (128, 8):
        start = max_tile - (max_tile % step)
        for tile in range(start, step - 1, -step):
            if T % tile == 0:
                return tile
    return T


def _vmem_limit_bytes(default=64 * 1024 * 1024, fraction=0.8):
    """Generation-aware VMEM request (~80% of physical capacity), with a safe fallback."""
    get_info = getattr(pltpu, "get_tpu_info", None)
    if get_info is not None:
        try:
            cap = getattr(get_info(), "vmem_capacity_bytes", None)
            if cap:
                return int(cap * fraction)
        except Exception:
            pass
    return default


def attention_block(x, attention_mask, params, *, n_head, use_approx_gelu=False):
    """x: (B, T, C) float32; attention_mask: (B, T) (1 = keep, 0 = masked out)."""
    B, T, C = x.shape
    c = C // n_head
    I = params["w1"].shape[1]
    tq = _choose_q_tile(T)
    nq = T // tq

    bf16, f32 = jnp.bfloat16, jnp.float32
    scale = 1.0 / (c ** 0.5)

    # One-time host-side prep: fold softmax scale into the Q projection, cast MXU operands
    # to bf16, precompute the additive key-mask bias.
    wq = (params["wq"] * scale).astype(bf16)
    bq = (params["bq"] * scale).astype(f32)
    wk = params["wk"].astype(bf16)
    wv = params["wv"].astype(bf16)
    wo = params["wo"].astype(bf16)
    w1 = params["w1"].astype(bf16)
    w2 = params["w2"].astype(bf16)

    x_kv = x.astype(bf16)                                              # K/V matmul operand
    mask_bias = jnp.where(attention_mask == 0,
                          jnp.float32(-1e9), jnp.float32(0.0)).reshape(B, 1, T)

    args = (
        x, x_kv, mask_bias,
        wq, bq, wk, params["bk"].astype(f32), wv, params["bv"].astype(f32),
        wo, params["bo"].astype(f32),
        params["g1"].astype(f32), params["be1"].astype(f32),
        w1, params["b1"].astype(f32), w2, params["b2"].astype(f32),
        params["g2"].astype(f32), params["be2"].astype(f32),
    )

    def const_spec(shape):
        zeros = (0,) * len(shape)
        return pl.BlockSpec(shape, lambda b, qi, _z=zeros: _z)         # grid-constant block

    in_specs = [
        pl.BlockSpec((1, tq, C), lambda b, qi: (b, qi, 0)),            # query rows (f32)
        pl.BlockSpec((1, T, C), lambda b, qi: (b, 0, 0)),              # full-T rows (bf16)
        pl.BlockSpec((1, 1, T), lambda b, qi: (b, 0, 0)),              # additive mask bias
        const_spec((C, C)), const_spec((1, C)),                        # wq (scaled), bq
        const_spec((C, C)), const_spec((1, C)),                        # wk, bk
        const_spec((C, C)), const_spec((1, C)),                        # wv, bv
        const_spec((C, C)), const_spec((1, C)),                        # wo, bo
        const_spec((1, C)), const_spec((1, C)),                        # ln1 gamma, beta
        const_spec((C, I)), const_spec((1, I)),                        # w1, b1
        const_spec((I, C)), const_spec((1, C)),                        # w2, b2
        const_spec((1, C)), const_spec((1, C)),                        # ln2 gamma, beta
    ]

    kernel = functools.partial(attention_block_kernel, n_head=n_head,
                               use_approx_gelu=use_approx_gelu)

    return pl.pallas_call(
        kernel,
        out_shape=jax.ShapeDtypeStruct((B, T, C), x.dtype),
        grid=(B, nq),
        in_specs=in_specs,
        out_specs=pl.BlockSpec((1, tq, C), lambda b, qi: (b, qi, 0)),
        scratch_shapes=[
            pltpu.VMEM((T, C), bf16),       # K = x @ Wk + bk, one batch element
            pltpu.VMEM((T, C), bf16),       # V = x @ Wv + bv
        ],
        compiler_params=pltpu.CompilerParams(
            # K/V scratch is written at qi == 0 and reused by later query tiles, so the
            # query-tile axis must stay sequential; batch stays parallel (megacore).
            dimension_semantics=("parallel", "arbitrary"),
            vmem_limit_bytes=_vmem_limit_bytes(),
        ),
    )(*args)


def attention_block_reference(x, attention_mask, params, *, n_head, eps=1e-5):
    """Pure-JAX f32 reference matching the torch AttentionBlock forward."""
    B, T, C = x.shape
    c = C // n_head
    q = x @ params["wq"] + params["bq"]
    k = x @ params["wk"] + params["bk"]
    v = x @ params["wv"] + params["bv"]
    split = lambda t: t.reshape(B, T, n_head, c).transpose(0, 2, 1, 3)   # (B,H,T,c)
    qh, kh, vh = split(q), split(k), split(v)
    s = jnp.einsum('bhqd,bhkd->bhqk', qh, kh) / jnp.sqrt(jnp.float32(c))
    s = s + jnp.where(attention_mask[:, None, None, :] == 0, -1e9, 0.0)
    p = jax.nn.softmax(s, axis=-1)
    o = jnp.einsum('bhqk,bhkd->bhqd', p, vh).transpose(0, 2, 1, 3).reshape(B, T, C)
    attn = o @ params["wo"] + params["bo"]

    def ln(h, g, b):
        mu = h.mean(-1, keepdims=True)
        var = ((h - mu) ** 2).mean(-1, keepdims=True)
        return (h - mu) * jax.lax.rsqrt(var + eps) * g + b

    x1 = ln(attn + x, params["g1"], params["be1"])
    ff = x1 @ params["w1"] + params["b1"]
    ff = 0.5 * ff * (1.0 + jax.lax.erf(ff / jnp.sqrt(jnp.float32(2.0))))
    ff = ff @ params["w2"] + params["b2"]
    return ln(ff + x1, params["g2"], params["be2"])


def init_params(key, hidden_size, intermediate_size):
    C, I = hidden_size, intermediate_size
    ks = jax.random.split(key, 8)
    s = 0.02
    return {
        "wq": s * jax.random.normal(ks[0], (C, C), jnp.float32),
        "bq": s * jax.random.normal(ks[1], (1, C), jnp.float32),
        "wk": s * jax.random.normal(ks[2], (C, C), jnp.float32),
        "bk": jnp.zeros((1, C), jnp.float32),
        "wv": s * jax.random.normal(ks[3], (C, C), jnp.float32),
        "bv": jnp.zeros((1, C), jnp.float32),
        "wo": s * jax.random.normal(ks[4], (C, C), jnp.float32),
        "bo": jnp.zeros((1, C), jnp.float32),
        "g1": jnp.ones((1, C), jnp.float32),
        "be1": jnp.zeros((1, C), jnp.float32),
        "w1": s * jax.random.normal(ks[5], (C, I), jnp.float32),
        "b1": s * jax.random.normal(ks[6], (1, I), jnp.float32),
        "w2": s * jax.random.normal(ks[7], (I, C), jnp.float32),
        "b2": jnp.zeros((1, C), jnp.float32),
        "g2": jnp.ones((1, C), jnp.float32),
        "be2": jnp.zeros((1, C), jnp.float32),
    }


if __name__ == "__main__":
    B, T, C, I, H = 2, 8, 32, 64, 4        # batch, seq, hidden, intermediate, heads
    key = jax.random.PRNGKey(0)
    kx, kp = jax.random.split(key)
    x = jax.random.normal(kx, (B, T, C), jnp.float32)
    # mask: last two key positions of batch 1 masked out, everything else kept.
    mask = jnp.ones((B, T), jnp.float32).at[1, -2:].set(0.0)
    params = init_params(kp, C, I)

    out = jax.block_until_ready(attention_block(x, mask, params, n_head=H))
    ref = attention_block_reference(x, mask, params, n_head=H)

    assert out.shape == (B, T, C)
    assert bool(jnp.all(jnp.isfinite(out)))
    assert float(jnp.max(jnp.abs(out - ref))) < 5e-2   # bf16 matmuls + approx reciprocal
    print("KERNEL_OK")
</pallas_src>

<mosaic_0001>
module attributes {stable_mosaic.version = 11 : i64} {
  func.func @attention_block_kernel(%arg0: i32, %arg1: i32, %arg2: memref<1x8x32xf32, #tpu.memory_space<vmem>>, %arg3: memref<1x8x32xbf16, #tpu.memory_space<vmem>>, %arg4: memref<1x1x8xf32, #tpu.memory_space<vmem>>, %arg5: memref<32x32xbf16, #tpu.memory_space<vmem>>, %arg6: memref<1x32xf32, #tpu.memory_space<vmem>>, %arg7: memref<32x32xbf16, #tpu.memory_space<vmem>>, %arg8: memref<1x32xf32, #tpu.memory_space<vmem>>, %arg9: memref<32x32xbf16, #tpu.memory_space<vmem>>, %arg10: memref<1x32xf32, #tpu.memory_space<vmem>>, %arg11: memref<32x32xbf16, #tpu.memory_space<vmem>>, %arg12: memref<1x32xf32, #tpu.memory_space<vmem>>, %arg13: memref<1x32xf32, #tpu.memory_space<vmem>>, %arg14: memref<1x32xf32, #tpu.memory_space<vmem>>, %arg15: memref<32x64xbf16, #tpu.memory_space<vmem>>, %arg16: memref<1x64xf32, #tpu.memory_space<vmem>>, %arg17: memref<64x32xbf16, #tpu.memory_space<vmem>>, %arg18: memref<1x32xf32, #tpu.memory_space<vmem>>, %arg19: memref<1x32xf32, #tpu.memory_space<vmem>>, %arg20: memref<1x32xf32, #tpu.memory_space<vmem>>, %arg21: memref<1x8x32xf32, #tpu.memory_space<vmem>>, %arg22: memref<8x32xbf16, #tpu.memory_space<vmem>>, %arg23: memref<8x32xbf16, #tpu.memory_space<vmem>>) attributes {dimension_semantics = [#tpu.dimension_semantics<parallel>, #tpu.dimension_semantics<arbitrary>], iteration_bounds = array<i64: 2, 1>, scalar_prefetch = 0 : i64, scratch_operands = 2 : i64, tpu.core_type = #tpu.core_type<tc>, window_params = [{transform_indices = @transform_0, window_bounds = array<i64: 1, 8, 32>}, {transform_indices = @transform_1, window_bounds = array<i64: 1, 8, 32>}, {transform_indices = @transform_2, window_bounds = array<i64: 1, 1, 8>}, {pipeline_mode = #tpu.pipeline_mode<synchronous>, transform_indices = @transform_3, window_bounds = array<i64: 32, 32>}, {pipeline_mode = #tpu.pipeline_mode<synchronous>, transform_indices = @transform_4, window_bounds = array<i64: 1, 32>}, {pipeline_mode = #tpu.pipeline_mode<synchronous>, transform_indices = @transform_5, window_bounds = array<i64: 32, 32>}, {pipeline_mode = #tpu.pipeline_mode<synchronous>, transform_indices = @transform_6, window_bounds = array<i64: 1, 32>}, {pipeline_mode = #tpu.pipeline_mode<synchronous>, transform_indices = @transform_7, window_bounds = array<i64: 32, 32>}, {pipeline_mode = #tpu.pipeline_mode<synchronous>, transform_indices = @transform_8, window_bounds = array<i64: 1, 32>}, {pipeline_mode = #tpu.pipeline_mode<synchronous>, transform_indices = @transform_9, window_bounds = array<i64: 32, 32>}, {pipeline_mode = #tpu.pipeline_mode<synchronous>, transform_indices = @transform_10, window_bounds = array<i64: 1, 32>}, {pipeline_mode = #tpu.pipeline_mode<synchronous>, transform_indices = @transform_11, window_bounds = array<i64: 1, 32>}, {pipeline_mode = #tpu.pipeline_mode<synchronous>, transform_indices = @transform_12, window_bounds = array<i64: 1, 32>}, {pipeline_mode = #tpu.pipeline_mode<synchronous>, transform_indices = @transform_13, window_bounds = array<i64: 32, 64>}, {pipeline_mode = #tpu.pipeline_mode<synchronous>, transform_indices = @transform_14, window_bounds = array<i64: 1, 64>}, {pipeline_mode = #tpu.pipeline_mode<synchronous>, transform_indices = @transform_15, window_bounds = array<i64: 64, 32>}, {pipeline_mode = #tpu.pipeline_mode<synchronous>, transform_indices = @transform_16, window_bounds = array<i64: 1, 32>}, {pipeline_mode = #tpu.pipeline_mode<synchronous>, transform_indices = @transform_17, window_bounds = array<i64: 1, 32>}, {pipeline_mode = #tpu.pipeline_mode<synchronous>, transform_indices = @transform_18, window_bounds = array<i64: 1, 32>}, {transform_indices = @transform_19, window_bounds = array<i64: 1, 8, 32>}]} {
    %c0 = arith.constant 0 : index
    %c0_0 = arith.constant 0 : index
    %c0_1 = arith.constant 0 : index
    %0 = vector.load %arg2[%c0, %c0_0, %c0_1] : memref<1x8x32xf32, #tpu.memory_space<vmem>>, vector<1x8x32xf32>
    %1 = vector.shape_cast %0 : vector<1x8x32xf32> to vector<8x32xf32>
    %c0_i32 = arith.constant 0 : i32
    %2 = arith.cmpi eq, %arg1, %c0_i32 : i32
    %3 = arith.extui %2 : i1 to i32
    %c0_i32_2 = arith.constant 0 : i32
    %4 = arith.cmpi ne, %3, %c0_i32_2 : i32
    scf.if %4 {
      %c0_69 = arith.constant 0 : index
      %c0_70 = arith.constant 0 : index
      %c0_71 = arith.constant 0 : index
      %171 = vector.load %arg3[%c0_69, %c0_70, %c0_71] : memref<1x8x32xbf16, #tpu.memory_space<vmem>>, vector<1x8x32xbf16>
      %172 = vector.shape_cast %171 : vector<1x8x32xbf16> to vector<8x32xbf16>
      %c0_72 = arith.constant 0 : index
      %c0_73 = arith.constant 0 : index
      %173 = vector.load %arg7[%c0_72, %c0_73] : memref<32x32xbf16, #tpu.memory_space<vmem>>, vector<32x32xbf16>
      %cst_74 = arith.constant dense<0.000000e+00> : vector<8x32xf32>
      %174 = tpu.matmul %172, %173, %cst_74 {dimension_numbers = #tpu.dot_dimension_numbers<[1], [0], [0], [1], [0, 0, 1, 1], [], []>} : vector<8x32xbf16>, vector<32x32xbf16>, vector<8x32xf32> -> vector<8x32xf32>
      %c0_75 = arith.constant 0 : index
      %c0_76 = arith.constant 0 : index
      %175 = vector.load %arg8[%c0_75, %c0_76] : memref<1x32xf32, #tpu.memory_space<vmem>>, vector<1x32xf32>
      %176 = vector.broadcast %175 : vector<1x32xf32> to vector<8x32xf32>
      %177 = arith.addf %174, %176 : vector<8x32xf32>
      %c0_77 = arith.constant 0 : index
      %c0_78 = arith.constant 0 : index
      %178 = vector.load %arg9[%c0_77, %c0_78] : memref<32x32xbf16, #tpu.memory_space<vmem>>, vector<32x32xbf16>
      %cst_79 = arith.constant dense<0.000000e+00> : vector<8x32xf32>
      %179 = tpu.matmul %172, %178, %cst_79 {dimension_numbers = #tpu.dot_dimension_numbers<[1], [0], [0], [1], [0, 0, 1, 1], [], []>} : vector<8x32xbf16>, vector<32x32xbf16>, vector<8x32xf32> -> vector<8x32xf32>
      %c0_80 = arith.constant 0 : index
      %c0_81 = arith.constant 0 : index
      %180 = vector.load %arg10[%c0_80, %c0_81] : memref<1x32xf32, #tpu.memory_space<vmem>>, vector<1x32xf32>
      %181 = vector.broadcast %180 : vector<1x32xf32> to vector<8x32xf32>
      %182 = arith.addf %179, %181 : vector<8x32xf32>
      %183 = arith.truncf %177 : vector<8x32xf32> to vector<8x32xbf16>
      %c0_82 = arith.constant 0 : index
      %c0_83 = arith.constant 0 : index
      %184 = vector.load %arg22[%c0_82, %c0_83] : memref<8x32xbf16, #tpu.memory_space<vmem>>, vector<8x32xbf16>
      tpu.vector_store %arg22[%c0_82, %c0_83], %183 {strides = array<i32>} : memref<8x32xbf16, #tpu.memory_space<vmem>>, vector<8x32xbf16>,
      %185 = arith.truncf %182 : vector<8x32xf32> to vector<8x32xbf16>
      %c0_84 = arith.constant 0 : index
      %c0_85 = arith.constant 0 : index
      %186 = vector.load %arg23[%c0_84, %c0_85] : memref<8x32xbf16, #tpu.memory_space<vmem>>, vector<8x32xbf16>
      tpu.vector_store %arg23[%c0_84, %c0_85], %185 {strides = array<i32>} : memref<8x32xbf16, #tpu.memory_space<vmem>>, vector<8x32xbf16>,
    } else {
    }
    %5 = arith.truncf %1 : vector<8x32xf32> to vector<8x32xbf16>
    %c0_3 = arith.constant 0 : index
    %c0_4 = arith.constant 0 : index
    %6 = vector.load %arg5[%c0_3, %c0_4] : memref<32x32xbf16, #tpu.memory_space<vmem>>, vector<32x32xbf16>
    %cst = arith.constant dense<0.000000e+00> : vector<8x32xf32>
    %7 = tpu.matmul %5, %6, %cst {dimension_numbers = #tpu.dot_dimension_numbers<[1], [0], [0], [1], [0, 0, 1, 1], [], []>} : vector<8x32xbf16>, vector<32x32xbf16>, vector<8x32xf32> -> vector<8x32xf32>
    %c0_5 = arith.constant 0 : index
    %c0_6 = arith.constant 0 : index
    %8 = vector.load %arg6[%c0_5, %c0_6] : memref<1x32xf32, #tpu.memory_space<vmem>>, vector<1x32xf32>
    %9 = vector.broadcast %8 : vector<1x32xf32> to vector<8x32xf32>
    %10 = arith.addf %7, %9 : vector<8x32xf32>
    %c0_7 = arith.constant 0 : index
    %c0_8 = arith.constant 0 : index
    %c0_9 = arith.constant 0 : index
    %11 = vector.load %arg4[%c0_7, %c0_8, %c0_9] : memref<1x1x8xf32, #tpu.memory_space<vmem>>, vector<1x1x8xf32>
    %12 = vector.shape_cast %11 : vector<1x1x8xf32> to vector<1x8xf32>
    %c0_10 = arith.constant 0 : index
    %c0_11 = arith.constant 0 : index
    %13 = vector.load %arg22[%c0_10, %c0_11] : memref<8x32xbf16, #tpu.memory_space<vmem>>, vector<8x32xbf16>
    %c0_12 = arith.constant 0 : index
    %c0_13 = arith.constant 0 : index
    %14 = vector.load %arg23[%c0_12, %c0_13] : memref<8x32xbf16, #tpu.memory_space<vmem>>, vector<8x32xbf16>
    %15 = vector.extract_strided_slice %10 {offsets = [0, 0], sizes = [8, 8], strides = [1, 1]} : vector<8x32xf32> to vector<8x8xf32>
    %16 = arith.truncf %15 : vector<8x8xf32> to vector<8x8xbf16>
    %17 = vector.extract_strided_slice %13 {offsets = [0, 0], sizes = [8, 8], strides = [1, 1]} : vector<8x32xbf16> to vector<8x8xbf16>
    %18 = vector.extract_strided_slice %14 {offsets = [0, 0], sizes = [8, 8], strides = [1, 1]} : vector<8x32xbf16> to vector<8x8xbf16>
    "tpu.trace_start"() <{level = 10 : i32, message = "qd,kd->qk"}> : () -> ()
    %cst_14 = arith.constant dense<0.000000e+00> : vector<8x8xf32>
    %19 = tpu.matmul %16, %17, %cst_14 {dimension_numbers = #tpu.dot_dimension_numbers<[1], [1], [0], [0], [0, 0, 1, 0], [], []>} : vector<8x8xbf16>, vector<8x8xbf16>, vector<8x8xf32> -> vector<8x8xf32>
    "tpu.trace_stop"() : () -> ()
    %20 = vector.broadcast %12 : vector<1x8xf32> to vector<8x8xf32>
    %21 = arith.addf %19, %20 : vector<8x8xf32>
    %cst_15 = arith.constant dense<0xFF800000> : vector<8xf32>
    %22 = vector.multi_reduction <maximumf>, %21, %cst_15 [1] : vector<8x8xf32> to vector<8xf32>
    %23 = vector.shape_cast %22 : vector<8xf32> to vector<8x1xf32>
    %24 = vector.broadcast %23 : vector<8x1xf32> to vector<8x8xf32>
    %25 = arith.subf %21, %24 : vector<8x8xf32>
    %26 = math.exp %25 : vector<8x8xf32>
    %cst_16 = arith.constant dense<0.000000e+00> : vector<8xf32>
    %27 = vector.multi_reduction <add>, %26, %cst_16 [1] : vector<8x8xf32> to vector<8xf32>
    %28 = vector.shape_cast %27 : vector<8xf32> to vector<8x1xf32>
    %29 = arith.truncf %26 : vector<8x8xf32> to vector<8x8xbf16>
    %cst_17 = arith.constant dense<0.000000e+00> : vector<8x8xf32>
    %30 = tpu.matmul %29, %18, %cst_17 {dimension_numbers = #tpu.dot_dimension_numbers<[1], [0], [0], [1], [0, 0, 1, 1], [], []>} : vector<8x8xbf16>, vector<8x8xbf16>, vector<8x8xf32> -> vector<8x8xf32>
    %31 = tpu.reciprocal %28 {approx = true} : vector<8x1xf32> -> vector<8x1xf32>
    %32 = vector.broadcast %31 : vector<8x1xf32> to vector<8x8xf32>
    %33 = arith.mulf %30, %32 : vector<8x8xf32>
    %34 = vector.extract_strided_slice %10 {offsets = [0, 8], sizes = [8, 8], strides = [1, 1]} : vector<8x32xf32> to vector<8x8xf32>
    %35 = arith.truncf %34 : vector<8x8xf32> to vector<8x8xbf16>
    %36 = vector.extract_strided_slice %13 {offsets = [0, 8], sizes = [8, 8], strides = [1, 1]} : vector<8x32xbf16> to vector<8x8xbf16>
    %37 = vector.extract_strided_slice %14 {offsets = [0, 8], sizes = [8, 8], strides = [1, 1]} : vector<8x32xbf16> to vector<8x8xbf16>
    "tpu.trace_start"() <{level = 10 : i32, message = "qd,kd->qk"}> : () -> ()
    %cst_18 = arith.constant dense<0.000000e+00> : vector<8x8xf32>
    %38 = tpu.matmul %35, %36, %cst_18 {dimension_numbers = #tpu.dot_dimension_numbers<[1], [1], [0], [0], [0, 0, 1, 0], [], []>} : vector<8x8xbf16>, vector<8x8xbf16>, vector<8x8xf32> -> vector<8x8xf32>
    "tpu.trace_stop"() : () -> ()
    %39 = vector.broadcast %12 : vector<1x8xf32> to vector<8x8xf32>
    %40 = arith.addf %38, %39 : vector<8x8xf32>
    %cst_19 = arith.constant dense<0xFF800000> : vector<8xf32>
    %41 = vector.multi_reduction <maximumf>, %40, %cst_19 [1] : vector<8x8xf32> to vector<8xf32>
    %42 = vector.shape_cast %41 : vector<8xf32> to vector<8x1xf32>
    %43 = vector.broadcast %42 : vector<8x1xf32> to vector<8x8xf32>
    %44 = arith.subf %40, %43 : vector<8x8xf32>
    %45 = math.exp %44 : vector<8x8xf32>
    %cst_20 = arith.constant dense<0.000000e+00> : vector<8xf32>
    %46 = vector.multi_reduction <add>, %45, %cst_20 [1] : vector<8x8xf32> to vector<8xf32>
    %47 = vector.shape_cast %46 : vector<8xf32> to vector<8x1xf32>
    %48 = arith.truncf %45 : vector<8x8xf32> to vector<8x8xbf16>
    %cst_21 = arith.constant dense<0.000000e+00> : vector<8x8xf32>
    %49 = tpu.matmul %48, %37, %cst_21 {dimension_numbers = #tpu.dot_dimension_numbers<[1], [0], [0], [1], [0, 0, 1, 1], [], []>} : vector<8x8xbf16>, vector<8x8xbf16>, vector<8x8xf32> -> vector<8x8xf32>
    %50 = tpu.reciprocal %47 {approx = true} : vector<8x1xf32> -> vector<8x1xf32>
    %51 = vector.broadcast %50 : vector<8x1xf32> to vector<8x8xf32>
    %52 = arith.mulf %49, %51 : vector<8x8xf32>
    %53 = vector.extract_strided_slice %10 {offsets = [0, 16], sizes = [8, 8], strides = [1, 1]} : vector<8x32xf32> to vector<8x8xf32>
    %54 = arith.truncf %53 : vector<8x8xf32> to vector<8x8xbf16>
    %55 = vector.extract_strided_slice %13 {offsets = [0, 16], sizes = [8, 8], strides = [1, 1]} : vector<8x32xbf16> to vector<8x8xbf16>
    %56 = vector.extract_strided_slice %14 {offsets = [0, 16], sizes = [8, 8], strides = [1, 1]} : vector<8x32xbf16> to vector<8x8xbf16>
    "tpu.trace_start"() <{level = 10 : i32, message = "qd,kd->qk"}> : () -> ()
    %cst_22 = arith.constant dense<0.000000e+00> : vector<8x8xf32>
    %57 = tpu.matmul %54, %55, %cst_22 {dimension_numbers = #tpu.dot_dimension_numbers<[1], [1], [0], [0], [0, 0, 1, 0], [], []>} : vector<8x8xbf16>, vector<8x8xbf16>, vector<8x8xf32> -> vector<8x8xf32>
    "tpu.trace_stop"() : () -> ()
    %58 = vector.broadcast %12 : vector<1x8xf32> to vector<8x8xf32>
    %59 = arith.addf %57, %58 : vector<8x8xf32>
    %cst_23 = arith.constant dense<0xFF800000> : vector<8xf32>
    %60 = vector.multi_reduction <maximumf>, %59, %cst_23 [1] : vector<8x8xf32> to vector<8xf32>
    %61 = vector.shape_cast %60 : vector<8xf32> to vector<8x1xf32>
    %62 = vector.broadcast %61 : vector<8x1xf32> to vector<8x8xf32>
    %63 = arith.subf %59, %62 : vector<8x8xf32>
    %64 = math.exp %63 : vector<8x8xf32>
    %cst_24 = arith.constant dense<0.000000e+00> : vector<8xf32>
    %65 = vector.multi_reduction <add>, %64, %cst_24 [1] : vector<8x8xf32> to vector<8xf32>
    %66 = vector.shape_cast %65 : vector<8xf32> to vector<8x1xf32>
    %67 = arith.truncf %64 : vector<8x8xf32> to vector<8x8xbf16>
    %cst_25 = arith.constant dense<0.000000e+00> : vector<8x8xf32>
    %68 = tpu.matmul %67, %56, %cst_25 {dimension_numbers = #tpu.dot_dimension_numbers<[1], [0], [0], [1], [0, 0, 1, 1], [], []>} : vector<8x8xbf16>, vector<8x8xbf16>, vector<8x8xf32> -> vector<8x8xf32>
    %69 = tpu.reciprocal %66 {approx = true} : vector<8x1xf32> -> vector<8x1xf32>
    %70 = vector.broadcast %69 : vector<8x1xf32> to vector<8x8xf32>
    %71 = arith.mulf %68, %70 : vector<8x8xf32>
    %72 = vector.extract_strided_slice %10 {offsets = [0, 24], sizes = [8, 8], strides = [1, 1]} : vector<8x32xf32> to vector<8x8xf32>
    %73 = arith.truncf %72 : vector<8x8xf32> to vector<8x8xbf16>
    %74 = vector.extract_strided_slice %13 {offsets = [0, 24], sizes = [8, 8], strides = [1, 1]} : vector<8x32xbf16> to vector<8x8xbf16>
    %75 = vector.extract_strided_slice %14 {offsets = [0, 24], sizes = [8, 8], strides = [1, 1]} : vector<8x32xbf16> to vector<8x8xbf16>
    "tpu.trace_start"() <{level = 10 : i32, message = "qd,kd->qk"}> : () -> ()
    %cst_26 = arith.constant dense<0.000000e+00> : vector<8x8xf32>
    %76 = tpu.matmul %73, %74, %cst_26 {dimension_numbers = #tpu.dot_dimension_numbers<[1], [1], [0], [0], [0, 0, 1, 0], [], []>} : vector<8x8xbf16>, vector<8x8xbf16>, vector<8x8xf32> -> vector<8x8xf32>
    "tpu.trace_stop"() : () -> ()
    %77 = vector.broadcast %12 : vector<1x8xf32> to vector<8x8xf32>
    %78 = arith.addf %76, %77 : vector<8x8xf32>
    %cst_27 = arith.constant dense<0xFF800000> : vector<8xf32>
    %79 = vector.multi_reduction <maximumf>, %78, %cst_27 [1] : vector<8x8xf32> to vector<8xf32>
    %80 = vector.shape_cast %79 : vector<8xf32> to vector<8x1xf32>
    %81 = vector.broadcast %80 : vector<8x1xf32> to vector<8x8xf32>
    %82 = arith.subf %78, %81 : vector<8x8xf32>
    %83 = math.exp %82 : vector<8x8xf32>
    %cst_28 = arith.constant dense<0.000000e+00> : vector<8xf32>
    %84 = vector.multi_reduction <add>, %83, %cst_28 [1] : vector<8x8xf32> to vector<8xf32>
    %85 = vector.shape_cast %84 : vector<8xf32> to vector<8x1xf32>
    %86 = arith.truncf %83 : vector<8x8xf32> to vector<8x8xbf16>
    %cst_29 = arith.constant dense<0.000000e+00> : vector<8x8xf32>
    %87 = tpu.matmul %86, %75, %cst_29 {dimension_numbers = #tpu.dot_dimension_numbers<[1], [0], [0], [1], [0, 0, 1, 1], [], []>} : vector<8x8xbf16>, vector<8x8xbf16>, vector<8x8xf32> -> vector<8x8xf32>
    %88 = tpu.reciprocal %85 {approx = true} : vector<8x1xf32> -> vector<8x1xf32>
    %89 = vector.broadcast %88 : vector<8x1xf32> to vector<8x8xf32>
    %90 = arith.mulf %87, %89 : vector<8x8xf32>
    %91 = tpu.concatenate %33, %52, %71, %90 in 1 : vector<8x8xf32>, vector<8x8xf32>, vector<8x8xf32>, vector<8x8xf32> -> vector<8x32xf32>
    %92 = arith.truncf %91 : vector<8x32xf32> to vector<8x32xbf16>
    %c0_30 = arith.constant 0 : index
    %c0_31 = arith.constant 0 : index
    %93 = vector.load %arg11[%c0_30, %c0_31] : memref<32x32xbf16, #tpu.memory_space<vmem>>, vector<32x32xbf16>
    %cst_32 = arith.constant dense<0.000000e+00> : vector<8x32xf32>
    %94 = tpu.matmul %92, %93, %cst_32 {dimension_numbers = #tpu.dot_dimension_numbers<[1], [0], [0], [1], [0, 0, 1, 1], [], []>} : vector<8x32xbf16>, vector<32x32xbf16>, vector<8x32xf32> -> vector<8x32xf32>
    %c0_33 = arith.constant 0 : index
    %c0_34 = arith.constant 0 : index
    %95 = vector.load %arg12[%c0_33, %c0_34] : memref<1x32xf32, #tpu.memory_space<vmem>>, vector<1x32xf32>
    %96 = vector.broadcast %95 : vector<1x32xf32> to vector<8x32xf32>
    %97 = arith.addf %94, %96 : vector<8x32xf32>
    %98 = arith.addf %97, %1 : vector<8x32xf32>
    %cst_35 = arith.constant dense<0.000000e+00> : vector<8xf32>
    %99 = vector.multi_reduction <add>, %98, %cst_35 [1] : vector<8x32xf32> to vector<8xf32>
    %100 = vector.shape_cast %99 : vector<8xf32> to vector<8x1xf32>
    %cst_36 = arith.constant 3.200000e+01 : f32
    %101 = vector.broadcast %cst_36 : f32 to vector<8x1xf32>
    %102 = arith.divf %100, %101 : vector<8x1xf32>
    %103 = vector.broadcast %102 : vector<8x1xf32> to vector<8x32xf32>
    %104 = arith.subf %98, %103 : vector<8x32xf32>
    %105 = arith.mulf %104, %104 : vector<8x32xf32>
    %cst_37 = arith.constant dense<0.000000e+00> : vector<8xf32>
    %106 = vector.multi_reduction <add>, %105, %cst_37 [1] : vector<8x32xf32> to vector<8xf32>
    %107 = vector.shape_cast %106 : vector<8xf32> to vector<8x1xf32>
    %cst_38 = arith.constant 3.200000e+01 : f32
    %108 = vector.broadcast %cst_38 : f32 to vector<8x1xf32>
    %109 = arith.divf %107, %108 : vector<8x1xf32>
    %110 = vector.broadcast %102 : vector<8x1xf32> to vector<8x32xf32>
    %111 = arith.subf %98, %110 : vector<8x32xf32>
    %cst_39 = arith.constant 9.99999974E-6 : f32
    %112 = vector.broadcast %cst_39 : f32 to vector<8x1xf32>
    %113 = arith.addf %109, %112 : vector<8x1xf32>
    %114 = math.rsqrt %113 : vector<8x1xf32>
    %115 = vector.broadcast %114 : vector<8x1xf32> to vector<8x32xf32>
    %116 = arith.mulf %111, %115 : vector<8x32xf32>
    %c0_40 = arith.constant 0 : index
    %c0_41 = arith.constant 0 : index
    %117 = vector.load %arg13[%c0_40, %c0_41] : memref<1x32xf32, #tpu.memory_space<vmem>>, vector<1x32xf32>
    %118 = vector.broadcast %117 : vector<1x32xf32> to vector<8x32xf32>
    %119 = arith.mulf %116, %118 : vector<8x32xf32>
    %c0_42 = arith.constant 0 : index
    %c0_43 = arith.constant 0 : index
    %120 = vector.load %arg14[%c0_42, %c0_43] : memref<1x32xf32, #tpu.memory_space<vmem>>, vector<1x32xf32>
    %121 = vector.broadcast %120 : vector<1x32xf32> to vector<8x32xf32>
    %122 = arith.addf %119, %121 : vector<8x32xf32>
    %123 = arith.truncf %122 : vector<8x32xf32> to vector<8x32xbf16>
    %c0_44 = arith.constant 0 : index
    %c0_45 = arith.constant 0 : index
    %124 = vector.load %arg15[%c0_44, %c0_45] : memref<32x64xbf16, #tpu.memory_space<vmem>>, vector<32x64xbf16>
    %cst_46 = arith.constant dense<0.000000e+00> : vector<8x64xf32>
    %125 = tpu.matmul %123, %124, %cst_46 {dimension_numbers = #tpu.dot_dimension_numbers<[1], [0], [0], [1], [0, 0, 1, 1], [], []>} : vector<8x32xbf16>, vector<32x64xbf16>, vector<8x64xf32> -> vector<8x64xf32>
    %c0_47 = arith.constant 0 : index
    %c0_48 = arith.constant 0 : index
    %126 = vector.load %arg16[%c0_47, %c0_48] : memref<1x64xf32, #tpu.memory_space<vmem>>, vector<1x64xf32>
    %127 = vector.broadcast %126 : vector<1x64xf32> to vector<8x64xf32>
    %128 = arith.addf %125, %127 : vector<8x64xf32>
    %cst_49 = arith.constant 5.000000e-01 : f32
    %129 = vector.broadcast %cst_49 : f32 to vector<8x64xf32>
    %130 = arith.mulf %129, %128 : vector<8x64xf32>
    %cst_50 = arith.constant 0.707106769 : f32
    %131 = vector.broadcast %cst_50 : f32 to vector<8x64xf32>
    %132 = arith.mulf %128, %131 : vector<8x64xf32>
    %133 = math.erf %132 : vector<8x64xf32>
    %cst_51 = arith.constant 1.000000e+00 : f32
    %134 = vector.broadcast %cst_51 : f32 to vector<8x64xf32>
    %135 = arith.addf %134, %133 : vector<8x64xf32>
    %136 = arith.mulf %130, %135 : vector<8x64xf32>
    %137 = arith.truncf %136 : vector<8x64xf32> to vector<8x64xbf16>
    %c0_52 = arith.constant 0 : index
    %c0_53 = arith.constant 0 : index
    %138 = vector.load %arg17[%c0_52, %c0_53] : memref<64x32xbf16, #tpu.memory_space<vmem>>, vector<64x32xbf16>
    %cst_54 = arith.constant dense<0.000000e+00> : vector<8x32xf32>
    %139 = tpu.matmul %137, %138, %cst_54 {dimension_numbers = #tpu.dot_dimension_numbers<[1], [0], [0], [1], [0, 0, 1, 1], [], []>} : vector<8x64xbf16>, vector<64x32xbf16>, vector<8x32xf32> -> vector<8x32xf32>
    %c0_55 = arith.constant 0 : index
    %c0_56 = arith.constant 0 : index
    %140 = vector.load %arg18[%c0_55, %c0_56] : memref<1x32xf32, #tpu.memory_space<vmem>>, vector<1x32xf32>
    %141 = vector.broadcast %140 : vector<1x32xf32> to vector<8x32xf32>
    %142 = arith.addf %139, %141 : vector<8x32xf32>
    %143 = arith.addf %142, %122 : vector<8x32xf32>
    %cst_57 = arith.constant dense<0.000000e+00> : vector<8xf32>
    %144 = vector.multi_reduction <add>, %143, %cst_57 [1] : vector<8x32xf32> to vector<8xf32>
    %145 = vector.shape_cast %144 : vector<8xf32> to vector<8x1xf32>
    %cst_58 = arith.constant 3.200000e+01 : f32
    %146 = vector.broadcast %cst_58 : f32 to vector<8x1xf32>
    %147 = arith.divf %145, %146 : vector<8x1xf32>
    %148 = vector.broadcast %147 : vector<8x1xf32> to vector<8x32xf32>
    %149 = arith.subf %143, %148 : vector<8x32xf32>
    %150 = arith.mulf %149, %149 : vector<8x32xf32>
    %cst_59 = arith.constant dense<0.000000e+00> : vector<8xf32>
    %151 = vector.multi_reduction <add>, %150, %cst_59 [1] : vector<8x32xf32> to vector<8xf32>
    %152 = vector.shape_cast %151 : vector<8xf32> to vector<8x1xf32>
    %cst_60 = arith.constant 3.200000e+01 : f32
    %153 = vector.broadcast %cst_60 : f32 to vector<8x1xf32>
    %154 = arith.divf %152, %153 : vector<8x1xf32>
    %155 = vector.broadcast %147 : vector<8x1xf32> to vector<8x32xf32>
    %156 = arith.subf %143, %155 : vector<8x32xf32>
    %cst_61 = arith.constant 9.99999974E-6 : f32
    %157 = vector.broadcast %cst_61 : f32 to vector<8x1xf32>
    %158 = arith.addf %154, %157 : vector<8x1xf32>
    %159 = math.rsqrt %158 : vector<8x1xf32>
    %160 = vector.broadcast %159 : vector<8x1xf32> to vector<8x32xf32>
    %161 = arith.mulf %156, %160 : vector<8x32xf32>
    %c0_62 = arith.constant 0 : index
    %c0_63 = arith.constant 0 : index
    %162 = vector.load %arg19[%c0_62, %c0_63] : memref<1x32xf32, #tpu.memory_space<vmem>>, vector<1x32xf32>
    %163 = vector.broadcast %162 : vector<1x32xf32> to vector<8x32xf32>
    %164 = arith.mulf %161, %163 : vector<8x32xf32>
    %c0_64 = arith.constant 0 : index
    %c0_65 = arith.constant 0 : index
    %165 = vector.load %arg20[%c0_64, %c0_65] : memref<1x32xf32, #tpu.memory_space<vmem>>, vector<1x32xf32>
    %166 = vector.broadcast %165 : vector<1x32xf32> to vector<8x32xf32>
    %167 = arith.addf %164, %166 : vector<8x32xf32>
    %c0_66 = arith.constant 0 : index
    %c0_67 = arith.constant 0 : index
    %c0_68 = arith.constant 0 : index
    %168 = vector.load %arg21[%c0_66, %c0_67, %c0_68] : memref<1x8x32xf32, #tpu.memory_space<vmem>>, vector<1x8x32xf32>
    %169 = vector.shape_cast %168 : vector<1x8x32xf32> to vector<8x32xf32>
    %170 = vector.shape_cast %167 : vector<8x32xf32> to vector<1x8x32xf32>
    tpu.vector_store %arg21[%c0_66, %c0_67, %c0_68], %170 {strides = array<i32>} : memref<1x8x32xf32, #tpu.memory_space<vmem>>, vector<1x8x32xf32>,
    return
  }
  func.func @transform_0(%arg0: i32, %arg1: i32) -> (i32, i32, i32) {
    %c0_i32 = arith.constant 0 : i32
    %c0_i32_0 = arith.constant 0 : i32
    return %arg0, %arg1, %c0_i32 : i32, i32, i32
  }
  func.func @transform_1(%arg0: i32, %arg1: i32) -> (i32, i32, i32) {
    %c0_i32 = arith.constant 0 : i32
    %c0_i32_0 = arith.constant 0 : i32
    %c0_i32_1 = arith.constant 0 : i32
    return %arg0, %c0_i32, %c0_i32_0 : i32, i32, i32
  }
  func.func @transform_2(%arg0: i32, %arg1: i32) -> (i32, i32, i32) {
    %c0_i32 = arith.constant 0 : i32
    %c0_i32_0 = arith.constant 0 : i32
    %c0_i32_1 = arith.constant 0 : i32
    return %arg0, %c0_i32, %c0_i32_0 : i32, i32, i32
  }
  func.func @transform_3(%arg0: i32, %arg1: i32) -> (i32, i32) {
    %c0_i32 = arith.constant 0 : i32
    %c0_i32_0 = arith.constant 0 : i32
    %c0_i32_1 = arith.constant 0 : i32
    return %c0_i32, %c0_i32_0 : i32, i32
  }
  func.func @transform_4(%arg0: i32, %arg1: i32) -> (i32, i32) {
    %c0_i32 = arith.constant 0 : i32
    %c0_i32_0 = arith.constant 0 : i32
    %c0_i32_1 = arith.constant 0 : i32
    return %c0_i32, %c0_i32_0 : i32, i32
  }
  func.func @transform_5(%arg0: i32, %arg1: i32) -> (i32, i32) {
    %c0_i32 = arith.constant 0 : i32
    %c0_i32_0 = arith.constant 0 : i32
    %c0_i32_1 = arith.constant 0 : i32
    return %c0_i32, %c0_i32_0 : i32, i32
  }
  func.func @transform_6(%arg0: i32, %arg1: i32) -> (i32, i32) {
    %c0_i32 = arith.constant 0 : i32
    %c0_i32_0 = arith.constant 0 : i32
    %c0_i32_1 = arith.constant 0 : i32
    return %c0_i32, %c0_i32_0 : i32, i32
  }
  func.func @transform_7(%arg0: i32, %arg1: i32) -> (i32, i32) {
    %c0_i32 = arith.constant 0 : i32
    %c0_i32_0 = arith.constant 0 : i32
    %c0_i32_1 = arith.constant 0 : i32
    return %c0_i32, %c0_i32_0 : i32, i32
  }
  func.func @transform_8(%arg0: i32, %arg1: i32) -> (i32, i32) {
    %c0_i32 = arith.constant 0 : i32
    %c0_i32_0 = arith.constant 0 : i32
    %c0_i32_1 = arith.constant 0 : i32
    return %c0_i32, %c0_i32_0 : i32, i32
  }
  func.func @transform_9(%arg0: i32, %arg1: i32) -> (i32, i32) {
    %c0_i32 = arith.constant 0 : i32
    %c0_i32_0 = arith.constant 0 : i32
    %c0_i32_1 = arith.constant 0 : i32
    return %c0_i32, %c0_i32_0 : i32, i32
  }
  func.func @transform_10(%arg0: i32, %arg1: i32) -> (i32, i32) {
    %c0_i32 = arith.constant 0 : i32
    %c0_i32_0 = arith.constant 0 : i32
    %c0_i32_1 = arith.constant 0 : i32
    return %c0_i32, %c0_i32_0 : i32, i32
  }
  func.func @transform_11(%arg0: i32, %arg1: i32) -> (i32, i32) {
    %c0_i32 = arith.constant 0 : i32
    %c0_i32_0 = arith.constant 0 : i32
    %c0_i32_1 = arith.constant 0 : i32
    return %c0_i32, %c0_i32_0 : i32, i32
  }
  func.func @transform_12(%arg0: i32, %arg1: i32) -> (i32, i32) {
    %c0_i32 = arith.constant 0 : i32
    %c0_i32_0 = arith.constant 0 : i32
    %c0_i32_1 = arith.constant 0 : i32
    return %c0_i32, %c0_i32_0 : i32, i32
  }
  func.func @transform_13(%arg0: i32, %arg1: i32) -> (i32, i32) {
    %c0_i32 = arith.constant 0 : i32
    %c0_i32_0 = arith.constant 0 : i32
    %c0_i32_1 = arith.constant 0 : i32
    return %c0_i32, %c0_i32_0 : i32, i32
  }
  func.func @transform_14(%arg0: i32, %arg1: i32) -> (i32, i32) {
    %c0_i32 = arith.constant 0 : i32
    %c0_i32_0 = arith.constant 0 : i32
    %c0_i32_1 = arith.constant 0 : i32
    return %c0_i32, %c0_i32_0 : i32, i32
  }
  func.func @transform_15(%arg0: i32, %arg1: i32) -> (i32, i32) {
    %c0_i32 = arith.constant 0 : i32
    %c0_i32_0 = arith.constant 0 : i32
    %c0_i32_1 = arith.constant 0 : i32
    return %c0_i32, %c0_i32_0 : i32, i32
  }
  func.func @transform_16(%arg0: i32, %arg1: i32) -> (i32, i32) {
    %c0_i32 = arith.constant 0 : i32
    %c0_i32_0 = arith.constant 0 : i32
    %c0_i32_1 = arith.constant 0 : i32
    return %c0_i32, %c0_i32_0 : i32, i32
  }
  func.func @transform_17(%arg0: i32, %arg1: i32) -> (i32, i32) {
    %c0_i32 = arith.constant 0 : i32
    %c0_i32_0 = arith.constant 0 : i32
    %c0_i32_1 = arith.constant 0 : i32
    return %c0_i32, %c0_i32_0 : i32, i32
  }
  func.func @transform_18(%arg0: i32, %arg1: i32) -> (i32, i32) {
    %c0_i32 = arith.constant 0 : i32
    %c0_i32_0 = arith.constant 0 : i32
    %c0_i32_1 = arith.constant 0 : i32
    return %c0_i32, %c0_i32_0 : i32, i32
  }
  func.func @transform_19(%arg0: i32, %arg1: i32) -> (i32, i32, i32) {
    %c0_i32 = arith.constant 0 : i32
    %c0_i32_0 = arith.constant 0 : i32
    return %arg0, %arg1, %c0_i32 : i32, i32, i32
  }
}

</mosaic_0001>

<bundles_post_ra>
// kernel: tpu_custom_call.1
= control target key start
LH: loop header
LB: loop body
LE: loop exit
PB: predicated region body
PF: predicated region fallthrough
CT: control target
= control target key end

     0   :  { %s2833_s0 = inlined_call_operand.vmem [shape: f32[2,8,32], index: 0, kind: input, shape index: {}]   ;;  %s2834_s1 = inlined_call_operand.hbm [shape: bf16[2,8,32], index: 1, kind: input, shape index: {}]   ;;  %s2835_s2 = inlined_call_operand.vmem [shape: f32[2,1,8], index: 2, kind: input, shape index: {}]   ;;  %s2836_s3 = inlined_call_operand.vmem [shape: bf16[32,32], index: 3, kind: input, shape index: {}]   ;;  %s2837_s4 = inlined_call_operand.vmem [shape: f32[1,32], index: 4, kind: input, shape index: {}]   ;;  %s2838_s5 = inlined_call_operand.vmem [shape: bf16[32,32], index: 5, kind: input, shape index: {}]   ;;  %s2839_s6 = inlined_call_operand.vmem [shape: f32[1,32], index: 6, kind: input, shape index: {}]   ;;  %s2840_s7 = inlined_call_operand.hbm [shape: bf16[32,32], index: 7, kind: input, shape index: {}]   ;;  %s2841_s8 = inlined_call_operand.vmem [shape: f32[1,32], index: 8, kind: input, shape index: {}]   ;;  %s2842_s9 = inlined_call_operand.hbm [shape: bf16[32,32], index: 9, kind: input, shape index: {}]   ;;  %s2843_s10 = inlined_call_operand.vmem [shape: f32[1,32], index: 10, kind: input, shape index: {}]   ;;  %s2844_s11 = inlined_call_operand.vmem [shape: f32[1,32], index: 11, kind: input, shape index: {}]   ;;  %s2845_s12 = inlined_call_operand.vmem [shape: f32[1,32], index: 12, kind: input, shape index: {}]   ;;  %s2846_s13 = inlined_call_operand.hbm [shape: bf16[32,64], index: 13, kind: input, shape index: {}]   ;;  %s2847_s14 = inlined_call_operand.vmem [shape: f32[1,64], index: 14, kind: input, shape index: {}]   ;;  %s2848_s15 = inlined_call_operand.vmem [shape: bf16[64,32], index: 15, kind: input, shape index: {}]   ;;  %s2849_s16 = inlined_call_operand.vmem [shape: f32[1,32], index: 16, kind: input, shape index: {}]   ;;  %s2850_s17 = inlined_call_operand.vmem [shape: f32[1,32], index: 17, kind: input, shape index: {}]   ;;  %s2851_s18 = inlined_call_operand.vmem [shape: f32[1,32], index: 18, kind: input, shape index: {}]   ;;  %s2852_s19 = inlined_call_operand.hbm [shape: f32[2,8,32], index: 19, kind: output, shape index: {}]  }
   0x1   :  { %2864 = sst [smem:[#allocation21_spill]] %s2833_s0 }
   0x2   :  { %2865 = sst [smem:[#allocation22_spill]] %s2834_s1 }
   0x3   :  { %2866 = sst [smem:[#allocation23_spill]] %s2835_s2 }
   0x4   :  { %2867 = sst [smem:[#allocation24_spill]] %s2836_s3 }
   0x5   :  { %2868 = sst [smem:[#allocation25_spill]] %s2837_s4 }
   0x6   :  { %2869 = sst [smem:[#allocation26_spill]] %s2840_s7 }
   0x7   :  { %2870 = sst [smem:[#allocation27_spill]] %s2842_s9 }
   0x8   :  { %2871 = sst [smem:[#allocation28_spill]] %s2846_s13 }
   0x9   :  { %2872 = sst [smem:[#allocation29_spill]] %s2847_s14 }
   0xa   :  { %2873 = sst [smem:[#allocation30_spill]] %s2849_s16 }
   0xb   :  { %2874 = sst [smem:[#allocation31_spill]] %s2850_s17 }
   0xc   :  { %2875 = sst [smem:[#allocation32_spill]] %s2851_s18 }
   0xd   :  { %2876 = sst [smem:[#allocation33_spill]] %s2852_s19 }
   0xe   :  { %24 = vsyncpa [#allocation5], 0 }
   0xf   :  { %26 = vsyncpa [#allocation5 + $0x1], 0 }
  0x10   :  { %27 = vsyncpa [#allocation8], 0 }
  0x11   :  { %28 = vsyncpa [#allocation11], 0 }
  0x12   :  { %29 = vsyncpa [#allocation6], 0 }
  0x13   :  { %31 = vsyncpa [#allocation6 + $0x1], 0  ;;  %s2479_s0 = smov 0   ;;  %s2481_s30 = smov 0  }
  0x14   :  { %s2483_s20 = smov 0   ;;  %s2485_s21 = smov 0  }
  0x15   :  { %s2487_s1 = smov 0   ;;  %s2489_s22 = smov 0  }
  0x16 LB: > { %2877 = sst [smem:[#allocation17_spill]] %s2342_s0  ;;  %s1830_s2 = sadd.s32 4294967295, %s2362_s22   ;;  %s2362_s22 = sphi %s2489_s22, %s37_s22   ;;  %s2358_s1 = sphi %s2487_s1, %s2915_s1   ;;  %s2354_s21 = sphi %s2485_s21, %s2914_s21   ;;  %s2350_s20 = sphi %s2483_s20, %s2913_s20   ;;  %s2346_s30 = sphi %s2481_s30, %s2912_s30   ;;  %s2342_s0 = sphi %s2479_s0, %s2911_s0  }
  0x17   : > { %s1831_s23 = sadd.s32 4294967294, %s2362_s22   ;;  %p97_p0 = scmp.ne.s32.totalorder %s2346_s30, %s2342_s0 }
  0x18   : > { %p2513_p1 = scmp.eq.s32.totalorder %s1830_s2, 0  ;;  %p2517_p2 = scmp.eq.s32.totalorder %s1830_s2, 1 }
  0x19   : > { %p491_p3 = scmp.eq.s32.totalorder %s1831_s23, 1  ;;  %p1832_p5 = scmp.ge.s32.totalorder %s2362_s22, 1 }
  0x1a   : > { %s2878_s24 = scalar_select %p2513_p1, 1, 0 }
  0x1b   : > { %p2523_p4 = por %p2513_p1, %p97_p0  ;;  %p2528_p6 = por %p491_p3, %p97_p0 }
  0x1c   : > { %p498_p7 = scmp.lt.s32.totalorder %s2362_s22, 3  ;;  %s2364_s28 = smov [#allocation7]  }
  0x1d   : > { %s2880_s3 = scalar_select %p2523_p4, 1, 0 }
  0x1e   : > { %s2881_s26 = scalar_select %p2528_p6, 1, 0 }
  0x1f   : > { %p2533_p8 = pnand %p1832_p5, %p498_p7  ;;  %s522_s29 = sshll.u32 %s2364_s28, 4  ;;  %s523_s29 = int_to_ptr.vmem [resolvable:$true] %s522_s29 }
  0x20   : > { %2882 = sst [smem:[#allocation18_spill]] %s2881_s26  ;;  %s2365_s23 = smov [#allocation9]  }
  0x21   : > { %s2883_s27 = scalar_select %p2533_p8, 1, 0 }
  0x22   : > { %p2043_p9 = pneg %p2533_p8  ;;  %s538_s26 = sshll.u32 %s2365_s23, 4  ;;  %s539_s26 = int_to_ptr.vmem [resolvable:$true] %s538_s26 }
  0x23   : > { %s2366_s0 = smov [#allocation10]   ;;  %s2179_s18 = scalar_lea.vmem %s523_s29, 256 }
  0x24   : > { %p2542_p11 = pnand %p2043_p9, %p2513_p1  ;;  %s560_s19 = sshll.u32 %s2366_s0, 4  ;;  %s561_s19 = int_to_ptr.vmem [resolvable:$true] %s560_s19 }
  0x25   : > { %p2180_p13 = scmp.ne.s32.totalorder %s523_s29, %s2179_s18  ;;  %p2187_p5 = scmp.lt.s32.totalorder %s523_s29, %s523_s29 }
  0x26   : > { %p2170_p12 = pneg %p2542_p11  ;;  %p2188_p7 = scmp.lt.s32.totalorder %s2179_s18, %s2179_s18 }
  0x28   : > { %p2182_p0 = pnand %p2180_p13, %p2170_p12  ;;  %p2189_p9 = por %p2188_p7, %p2187_p5 }
  0x2a   : > { %p2183_p3 = pneg %p2182_p0 }
  0x2c   : > { %p2190_p10 = pnand %p2189_p9, %p2183_p3 }
  0x2e   : > { %2193 = shalt.err (!%p2190_p10)
}
  0x2f   : > { %s2367_s28 = smov 64   ;;  %s2368_s23 = smov 4  }
  0x30   : > { %s2885_s7 = sld [smem:[#allocation26_spill]]  ;;  %s2205_s16 = scalar_lea.vmem %s539_s26, 256 }
  0x31   : > { %p2206_p6 = scmp.ne.s32.totalorder %s539_s26, %s2205_s16  ;;  %p2213_p1 = scmp.lt.s32.totalorder %s539_s26, %s539_s26 }
  0x32   : > { %p2214_p4 = scmp.lt.s32.totalorder %s2205_s16, %s2205_s16 }
  0x33   : > { %p2208_p13 = pnand %p2206_p6, %p2170_p12 }
  0x34   : > { %p2215_p5 = por %p2214_p4, %p2213_p1 }
  0x35   : > { %p2209_p0 = pneg %p2208_p13 }
  0x36   : > { %2046 = dma.hbm_to_vmem [thread:$0]  (!%p2542_p11), %s2885_s7, 256, %s523_s29, [#allocation8], %s2367_s28, %s2367_s28, %s2368_s23  }
  0x37   : > { %p2216_p3 = pnand %p2215_p5, %p2209_p0 }
  0x39   : > { %2219 = shalt.err (!%p2216_p3)
}
  0x3a   : > { %s2886_s9 = sld [smem:[#allocation27_spill]]  ;;  %s2231_s17 = scalar_lea.vmem %s561_s19, 256 }
  0x3b   : > { %p2232_p10 = scmp.ne.s32.totalorder %s561_s19, %s2231_s17  ;;  %p2239_p9 = scmp.lt.s32.totalorder %s561_s19, %s561_s19 }
  0x3c   : > { %p2240_p13 = scmp.lt.s32.totalorder %s2231_s17, %s2231_s17 }
  0x3d   : > { %p2234_p7 = pnand %p2232_p10, %p2170_p12 }
  0x3e   : > { %p2241_p8 = por %p2240_p13, %p2239_p9 }
  0x3f   : > { %p2235_p6 = pneg %p2234_p7 }
  0x40   : > { %2049 = dma.hbm_to_vmem [thread:$0]  (!%p2542_p11), %s2886_s9, 256, %s539_s26, [#allocation8], %s2367_s28, %s2367_s28, %s2368_s23  }
  0x41   : > { %p2242_p1 = pnand %p2241_p8, %p2235_p6 }
  0x43   : > { %2245 = shalt.err (!%p2242_p1)
}
  0x44   : > { %s2887_s13 = sld [smem:[#allocation28_spill]]  ;;  %s84_s14 = sadd.s32 1, %s2350_s20 }
  0x45   : > { %s49_s26 = sadd.s32 1, %s2358_s1  ;;  %p91_p4 = scmp.ne.s32.totalorder %s2350_s20, %s2346_s30 }
  0x46   : > { %p51_p8 = scmp.ge.s32.totalorder %s49_s26, 2  ;;  %p92_p12 = scmp.eq.s32.totalorder %s2362_s22, 0 }
  0x47   : > { %p2579_p0 = por %p2517_p2, %p91_p4  ;;  %p2064_p5 = scmp.lt.s32.totalorder %s2362_s22, 2 }
  0x48   : > { %s2917_s26 = smov (%p51_p8, %s49_s26), 0  ;;  %p93_p3 = por %p92_p12, %p91_p4 }
  0x49   : > { %s2888_s2 = scalar_select %p2579_p0, 1, 0 }
  0x4a   : > { %2052 = dma.hbm_to_vmem [thread:$0]  (!%p2542_p11), %s2887_s13, 256, %s561_s19, [#allocation11], %s2367_s28, %s2367_s28, %s2368_s23  }
  0x4b   : > { %2889 = sst [smem:[#allocation19_spill]] %s2888_s2  ;;  %s599_s0 = sand.u32 1, %s2350_s20  }
  0x4c   : > { %2890 = sst [smem:[#allocation20_spill]] %s2917_s26  ;;  %s81_s18 = ssub.s32 %s2358_s1, %s2917_s26 }
  0x4d   : > { %p82_p10 = scmp.eq.s32.totalorder %s81_s18, 0  ;;  %s1837_s19 = sshll.u32 %s599_s0, 2 }
  0x4e   : > { %s1838_s28 = sshll.u32 %s2358_s1, 6  ;;  %s2891_s29 = sld [smem:[#allocation22_spill]] }
  0x4f   : > { %s2591_s23 = scalar_select %p82_p10, %s2350_s20, %s84_s14  }
  0x50   : > { %s603_s7 = scalar_lea.vmem [#allocation4], %s1837_s19  ;;  %p2598_p2 = pnand %p2064_p5, %p93_p3 }
  0x51   : > { %s610_s9 = sshll.u32 %s603_s7, 4  ;;  %s600_s2 = scalar_lea.sflag [#allocation5], %s599_s0  ;;  %s611_s9 = int_to_ptr.vmem [resolvable:$true] %s610_s9 }
  0x52   : > { %p2248_p11 = pneg %p2598_p2  ;;  %s2259_s18 = scalar_lea.vmem %s611_s9, 64 }
  0x53   : > { %p2260_p7 = scmp.ne.s32.totalorder %s611_s9, %s2259_s18  ;;  %s2369_s14 = smov [#allocation4]  }
  0x54   : > { %s608_s25 = scalar_lea.hbm %s2891_s29, %s1838_s28  ;;  %s2264_s26 = sshll.u32 %s2369_s14, 4  ;;  %s2265_s26 = int_to_ptr.vmem [resolvable:$false] %s2264_s26 }
  0x55   : > { %p2262_p6 = pnand %p2260_p7, %p2248_p11  ;;  %s2266_s28 = scalar_lea.vmem %s2265_s26, 128 }
  0x56   : > { %p2267_p13 = scmp.lt.s32.totalorder %s611_s9, %s2265_s26  ;;  %p2268_p1 = scmp.lt.s32.totalorder %s2266_s28, %s2259_s18 }
  0x57   : > { %p2263_p9 = pneg %p2262_p6 }
  0x58   : > { %p2269_p4 = por %p2268_p1, %p2267_p13 }
  0x5a   : > { %p2270_p8 = pnand %p2269_p4, %p2263_p9 }
  0x5c   : > { %2273 = shalt.err (!%p2270_p8)
}
  0x5d   : > { %2056 = dma.hbm_to_vmem [thread:$0]  (!%p2598_p2), %s608_s25, 64, %s611_s9, %s600_s2  }
  0x5e   : > { %p2893_p12 = scmp.ne.s32.totalorder %s2883_s27, 0 }
  0x5f   : > { %s2609_s7 = sand.u32 (!%p2893_p12), 1, %s2346_s30   ;;  %p2894_p5 = scmp.ne.s32.totalorder (!%p2893_p12), %s2880_s3, 0 }
  0x60   : > { %625 = sbr.rel (%p2893_p12) target bundleno = 2372 (0x944), region = 96  ;;  %s1840_s0 = sshll.u32 (!%p2893_p12), %s2609_s7, 2 }
  0x61   : > { %s628_s19 = scalar_lea.sflag (!%p2893_p12), [#allocation5], %s2609_s7  ;;  %s631_s17 = scalar_lea.vmem (!%p2893_p12), [#allocation4], %s1840_s0 }
  0x65   : > { %2325 = dma.done.wait (%p2894_p5), %s628_s19, 64  }
  0x66   : > { %2327 = vsyncadd (%p2894_p5), %s628_s19, 4294967232  ;;  %p2895_p3 = scmp.ne.s32.totalorder %s2878_s24, 0 }
  0x68   : > { %2329 = dma.done.wait (%p2895_p3), [#allocation8], 512  }
  0x69   : > { %2331 = vsyncadd (%p2895_p3), [#allocation8], 4294966784 }
  0x6a   : > { %2333 = dma.done.wait (%p2895_p3), [#allocation11], 256  }
  0x6b   : > { %2335 = vsyncadd (%p2895_p3), [#allocation11], 4294967040  ;;  %v2370_v0 = vmov 0.0   ;;  %vm2371_vm0 = vmmov 0   ;;  %p708_p10 = scmp.lt.s32.totalorder %s2354_s21, 1  ;;  %v2130_v1 = vld [vmem:[%s2838_s5 + $0x8] sm:$0xff]  }
  0x6c   : > { %1927 = vmatprep.subr.bf16.mxu0 %v2370_v0  ;;  %1931 = vmatprep.mubr.msk.bf16.mxu0 %vm2371_vm0, %v2370_v0  ;;  %v2131_v2 = vld [vmem:[%s2838_s5] sm:$0xff]   ;;  %v724_v3 = vld [vmem:[%s631_s17] sm:$0xf]  ;;  %vm748_vm1 = vcmask 261120   ;;  %s2896_s29 = sld [smem:[#allocation24_spill]]  ;;  %v2134_v8 = vld [vmem:[#allocation7 + $0x8] sm:$0xff]  }
  0x6d   : > { %1935 = vmatprep.subr.bf16.mxu1 %v2370_v0  ;;  %1939 = vmatprep.mubr.msk.bf16.mxu1 %vm2371_vm0, %v2370_v0  ;;  %s2633_s9 = scalar_select %p708_p10, %s2354_s21, 1  ;;  %v2135_v9 = vld [vmem:[#allocation7] sm:$0xff]   ;;  %v1846_v10 = vld [vmem:[%s2839_s6] ss:$0 sm:$0xff]  ;;  %vm856_vm2 = vcmask 257024   ;;  %vm938_vm3 = vcmask 64512  }
  0x6e   : > { %1928 = vmatpush3.bf16.msra.mxu0 %v2130_v1  ;;  %s2897_s14 = sld [smem:[#allocation21_spill]]  ;;  %1936 = vmatpush3.bf16.msra.mxu1 %v2134_v8  ;;  %s2372_s27 = smov 112   ;;  %v1850_v27 = vld [vmem:[%s2841_s8] ss:$0 sm:$0xff]  ;;  %vm998_vm4 = vcmask 1043456   ;;  %vm1394_vm5 = vcmask 130048  }
  0x6f   : > { %s1845_s26 = sshll.u32 %s2633_s9, 3  ;;  %1929 = vmatprep.subr.bf16.mxu0 %v2370_v0  ;;  %1937 = vmatprep.subr.bf16.mxu1 %v2370_v0  ;;  %s2898_s4 = sld [smem:[#allocation25_spill]]  ;;  %vm1396_vm6 = vcmask 195584   ;;  %vm1608_vm7 = vcmask 523264  }
  0x70   : > { %s2374_s2 = smov 104   ;;  %s2376_s19 = smov 16  }
  0x71   : > { %s2377_s17 = smov 24   ;;  %s2900_s24 = sld [smem:[#allocation29_spill]] }
  0x72   : > { %v2132_v4 = vld [vmem:[%s2896_s29 + $0x8] sm:$0xff]   ;;  %1930 = vmatpush3.bf16.msra.mxu0 %v2131_v2  ;;  %v2133_v5 = vld [vmem:[%s2896_s29] sm:$0xff]   ;;  %1938 = vmatpush3.bf16.msra.mxu1 %v2135_v9  ;;  %s2378_s18 = smov [#allocation12]  }
  0x73   : > { %1943 = vmatprep.subr.bf16.mxu0 %v2370_v0  ;;  %1951 = vmatprep.subr.bf16.mxu1 %v2370_v0 }
  0x74   : > { %s714_s28 = scalar_lea.vmem %s2897_s14, %s1845_s26  ;;  %s2373_s26 = smov 120  }
  0x75   : > { %v2653_v6 = vld [vmem:[%s714_s28] sm:$0xff]  ;;  %1932 = vmatmul.mubr.msk.bf16.vlgmr.msra.gmra.mxu0 %vm748_vm1, %v724_v3  ;;  %1940 = vmatmul.mubr.msk.bf16.vlgmr.msra.gmra.mxu1 %vm748_vm1, %v724_v3  ;;  %s2899_s28 = sld [smem:[#allocation23_spill]] }
  0x76   : > { %1944 = vmatpush3.bf16.msra.mxu0 %v2132_v4  ;;  %1947 = vmatprep.mubr.msk.bf16.mxu0 %vm2371_vm0, %v2370_v0  ;;  %v860_v7 = vpack.c.bf16 %v2653_v6, %v2653_v6  ;;  %v1854_v17 = vld [vmem:[%s2898_s4] ss:$0 sm:$0xff]  ;;  %s2903_s14 = sld [smem:[#allocation31_spill]]  ;;  %s1684_s4 = scalar_lea.sflag [#allocation6], %s2609_s7 }
  0x77   : > { %1945 = vmatprep.subr.bf16.mxu0 %v2370_v0  ;;  %1953 = vmatprep.mubr.msk.bf16.mxu1 %vm2371_vm0, %v2370_v0 }
  0x7a   : > { %1946 = vmatpush3.bf16.msra.mxu0 %v2133_v5 }
  0x7b   : > { %1957 = vmatprep.subr.bf16.mxu0 %v2370_v0  ;;  %s717_s0 = scalar_lea.vmem %s2899_s28, %s2633_s9  ;;  %s2375_s9 = smov 8  }
  0x7c   : > { %v1858_v45 = vld [vmem:[%s717_s0] ss:$0 sm:$0xff] }
  0x7d   : > { %1948 = vmatmul.mubr.msk.bf16.vlgmr.msra.gmra.mxu0 %vm748_vm1, %v860_v7 }
  0x7e   : > { %1959 = vmatprep.mubr.msk.bf16.mxu0 %vm2371_vm0, %v2370_v0 }
 0x135   : > { %v786_v11 = vpop.f32.mrf.mxu0  ;;  %v849_v28 = vpop.f32.mrf.mxu1 }
 0x136   : > { %v787_v12 = vadd.f32 %v1846_v10, %v786_v11  ;;  %v850_v29 = vadd.f32 %v1850_v27, %v849_v28 }
 0x137   : > { %v1933_v13 = vpop.f32.mrf.mxu0  ;;  %v1941_v30 = vpop.f32.mrf.mxu1 }
 0x138   : > { %v855_v14 = vpack.c.bf16 %v787_v12, %v787_v12  ;;  %v858_v31 = vpack.c.bf16 %v850_v29, %v850_v29 }
 0x139   : > { %v789_v15 = vpop.f32.mrf.mxu0  ;;  %v852_v32 = vpop.f32.mrf.mxu1 }
 0x13a   : > { %857 = vst.msk [vmem:[#allocation2] sm:$0xf] %vm856_vm2, %v855_v14  ;;  %859 = vst.msk [vmem:[#allocation3] sm:$0xf] %vm856_vm2, %v858_v31 }
 0x13b   : > { %v1934_v16 = vpop.f32.mrf.mxu0  ;;  %v1942_v33 = vpop.f32.mrf.mxu1 }
 0x13d   : > { %v922_v18 = vpop.f32.mrf.mxu0 }
 0x13e   : > { %v923_v20 = vadd.f32 %v1854_v17, %v922_v18 }
 0x13f   : > { %v1949_v19 = vpop.f32.mrf.mxu0 }
 0x140   : > { %v931_v26 = vpack.c.bf16 %v923_v20, %v923_v20 }
 0x141   : > { %v929_v21 = vld [vmem:[#allocation2] sm:$0xf]  ;;  %v925_v22 = vpop.f32.mrf.mxu0  ;;  %v930_v34 = vld [vmem:[#allocation3] sm:$0xf] }
 0x142   : > { %v943_v23 = vsel %vm938_vm3, %v929_v21, 0  ;;  %v1861_v24 = vcombine.low %v929_v21, %v929_v21  ;;  %v1000_v35 = vsel %vm998_vm4, %v930_v34, 0  ;;  %v1863_v5 = vcombine.low %v930_v34, %v930_v34 }
 0x143   : > { %1952 = vmatpush3.bf16.xpose.msra.mxu1 %v943_v23  ;;  %v1950_v25 = vpop.f32.mrf.mxu0  ;;  %1958 = vmatpush3.bf16.msra.mxu0 %v1000_v35 }
 0x144   : > { %1163 = vrot.lane.b32.xlu1 %v1861_v24, %s2372_s27  ;;  %1050 = vrot.lane.b32.xlu0 %v1861_v24, %s2373_s26 }
 0x145   : > { %1963 = vmatprep.subr.bf16.mxu1 %v2370_v0  ;;  %1969 = vmatprep.subr.bf16.mxu0 %v2370_v0 }
 0x148   : > { %1161 = vrot.lane.b32.xlu1 %v931_v26, %s2372_s27  ;;  %1045 = vrot.lane.b32.xlu0 %v931_v26, %s2373_s26 }
 0x14a   : > { %1954 = vmatmul.mubr.msk.bf16.vlgmr.msra.gmra.mxu1 %vm938_vm3, %v931_v26 }
 0x14b   : > { %1965 = vmatprep.mubr.msk.bf16.mxu1 %vm2371_vm0, %v2370_v0 }
 0x14c   : > { %1271 = vrot.lane.b32.xlu1 %v931_v26, %s2374_s2  ;;  %1273 = vrot.lane.b32.xlu0 %v1861_v24, %s2374_s2 }
 0x1b6   : > { %v1051_v36 = vpop.permute.xlu0 %1050  ;;  %v1164_v38 = vpop.permute.xlu1 %1163 }
 0x1b7   : > { %v1056_v37 = vsel %vm938_vm3, %v1051_v36, 0  ;;  %v1169_v40 = vsel %vm938_vm3, %v1164_v38, 0 }
 0x1b8   : > { %1964 = vmatpush3.bf16.xpose.msra.mxu1 %v1056_v37 }
 0x1b9   : > { %1975 = vmatprep.subr.bf16.mxu1 %v2370_v0 }
 0x1ba   : > { %v1046_v39 = vpop.permute.xlu0 %1045  ;;  %v1162_v42 = vpop.permute.xlu1 %1161 }
 0x1be   : > { %v1274_v41 = vpop.permute.xlu0 %1273  ;;  %v1272_v44 = vpop.permute.xlu1 %1271 }
 0x1bf   : > { %1966 = vmatmul.mubr.msk.bf16.vlgmr.msra.gmra.mxu1 %vm938_vm3, %v1046_v39  ;;  %v1279_v43 = vsel %vm938_vm3, %v1274_v41, 0 }
 0x1c0   : > { %1976 = vmatpush3.bf16.xpose.msra.mxu1 %v1169_v40  ;;  %1977 = vmatprep.mubr.msk.bf16.mxu1 %vm2371_vm0, %v2370_v0 }
 0x1c1   : > { %1987 = vmatprep.subr.bf16.mxu1 %v2370_v0 }
 0x1c7   : > { %1978 = vmatmul.mubr.msk.bf16.vlgmr.msra.gmra.mxu1 %vm938_vm3, %v1162_v42 }
 0x1c8   : > { %1988 = vmatpush3.bf16.xpose.msra.mxu1 %v1279_v43  ;;  %1989 = vmatprep.mubr.msk.bf16.mxu1 %vm2371_vm0, %v2370_v0 }
 0x1c9   : > { %1999 = vmatprep.subr.bf16.mxu1 %v2370_v0 }
 0x1cf   : > { %1990 = vmatmul.mubr.msk.bf16.vlgmr.msra.gmra.mxu1 %vm938_vm3, %v1272_v44 }
 0x1d0   : > { %2003 = vmatprep.mubr.msk.bf16.mxu1 %vm2371_vm0, %v2370_v0 }
 0x20a   : > { %v979_v46 = vpop.f32.mrf.mxu1 }
 0x20b   : > { %v980_v47 = vadd.f32 %v1858_v45, %v979_v46 }
 0x20c   : > { %v1955_v48 = vpop.f32.mrf.mxu1 }
 0x20d   : > { %v985_v49 = vsel %vm938_vm3, %v980_v47, -inf }
 0x20e   : > { %986 = vmax.xlane.f32.xlu0 %v985_v49  ;;  %v982_v50 = vpop.f32.mrf.mxu1 }
 0x210   : > { %v1956_v51 = vpop.f32.mrf.mxu1 }
 0x27f   : > { %v1092_v52 = vpop.f32.mrf.mxu1 }
 0x280   : > { %v1093_v53 = vadd.f32 %v1858_v45, %v1092_v52  ;;  %v2139_v52 = vld [vmem:[#allocation9] sm:$0xff]  }
 0x281   : > { %v1967_v54 = vpop.f32.mrf.mxu1 }
 0x282   : > { %v1098_v55 = vsel %vm938_vm3, %v1093_v53, -inf }
 0x283   : > { %1099 = vmax.xlane.f32.xlu1 %v1098_v55  ;;  %v1095_v56 = vpop.f32.mrf.mxu1 }
 0x285   : > { %v1968_v57 = vpop.f32.mrf.mxu1 }
 0x287   : > { %v1205_v58 = vpop.f32.mrf.mxu1 }
 0x288   : > { %v1206_v59 = vadd.f32 %v1858_v45, %v1205_v58 }
 0x289   : > { %v1979_v60 = vpop.f32.mrf.mxu1 }
 0x28a   : > { %v1211_v61 = vsel %vm938_vm3, %v1206_v59, -inf }
 0x28b   : > { %1212 = vmax.xlane.f32.xlu0 %v1211_v61  ;;  %v1208_v62 = vpop.f32.mrf.mxu1 }
 0x28d   : > { %v1980_v63 = vpop.f32.mrf.mxu1 }
 0x28f   : > { %v1315_v1 = vpop.f32.mrf.mxu1 }
 0x290   : > { %v1316_v2 = vadd.f32 %v1858_v45, %v1315_v1  ;;  %v2138_v45 = vld [vmem:[#allocation9 + $0x8] sm:$0xff]  }
 0x291   : > { %v1991_v3 = vpop.f32.mrf.mxu1  ;;  %2000 = vmatpush3.bf16.msra.mxu1 %v2138_v45 }
 0x292   : > { %v1321_v4 = vsel %vm938_vm3, %v1316_v2, -inf  ;;  %2001 = vmatprep.subr.bf16.mxu1 %v2370_v0 }
 0x293   : > { %1322 = vmax.xlane.f32.xlu0 %v1321_v4  ;;  %v1318_v7 = vpop.f32.mrf.mxu1 }
 0x294   : > { %1111 = vrot.lane.b32.xlu1 %v1863_v5, %s2373_s26  ;;  %s2901_s26 = sld [smem:[#allocation30_spill]] }
 0x295   : > { %v1992_v8 = vpop.f32.mrf.mxu1  ;;  %2002 = vmatpush3.bf16.msra.mxu1 %v2139_v52 }
 0x296   : > { %2015 = vmatprep.subr.bf16.mxu1 %v2370_v0 }
 0x297   : > { %v987_v9 = vpop.xlane.xlu0 %986 }
 0x298   : > { %v988_v10 = vsub.f32 %v980_v47, %v987_v9  ;;  %1331 = vrot.lane.b32.xlu1 %v1863_v5, %s2374_s2  ;;  %s1844_s2 = sshll.u32 %s2609_s7, 3 }
 0x29a   : > { %v989_v11 = vmul.f32 1.442695, %v988_v10 }
 0x29c   : > { %2146 = vpow2.f32 %v989_v11 }
 0x2a9   : > { %v2147_v12 = vpop.eup %2146  ;;  %1221 = vrot.lane.b32.xlu0 %v1863_v5, %s2372_s27  ;;  %s2905_s27 = sld [smem:[#allocation33_spill]] }
 0x2aa   : > { %v994_v13 = vpack.c.bf16 %v2147_v12, %v2147_v12  ;;  %v991_v30 = vsel %vm938_vm3, %v2147_v12, 0.0 }
 0x2ac   : > { %1960 = vmatmul.mubr.msk.bf16.vlgmr.msra.gmra.mxu0 %vm938_vm3, %v994_v13 }
 0x2ad   : > { %1971 = vmatprep.mubr.msk.bf16.mxu0 %vm2371_vm0, %v2370_v0 }
 0x30c   : > { %v1100_v14 = vpop.xlane.xlu1 %1099 }
 0x30d   : > { %v1101_v15 = vsub.f32 %v1093_v53, %v1100_v14  ;;  %v1869_v14 = vld [vmem:[%s2843_s10] ss:$0 sm:$0xff] }
 0x30f   : > { %v1102_v16 = vmul.f32 1.442695, %v1101_v15 }
 0x310   : > { %v1112_v17 = vpop.permute.xlu1 %1111 }
 0x311   : > { %2148 = vpow2.f32 %v1102_v16  ;;  %v1117_v18 = vsel %vm998_vm4, %v1112_v17, 0 }
 0x312   : > { %1970 = vmatpush3.bf16.msra.mxu0 %v1117_v18 }
 0x313   : > { %1981 = vmatprep.subr.bf16.mxu0 %v2370_v0 }
 0x314   : > { %v1213_v19 = vpop.xlane.xlu0 %1212  ;;  %v1332_v32 = vpop.permute.xlu1 %1331 }
 0x315   : > { %v1214_v20 = vsub.f32 %v1206_v59, %v1213_v19  ;;  %v1337_v35 = vsel %vm998_vm4, %v1332_v32, 0  ;;  %v1873_v32 = vld [vmem:[%s2844_s11] ss:$0 sm:$0xff] }
 0x317   : > { %v1215_v21 = vmul.f32 1.442695, %v1214_v20 }
 0x319   : > { %2150 = vpow2.f32 %v1215_v21 }
 0x31c   : > { %v1323_v22 = vpop.xlane.xlu0 %1322 }
 0x31d   : > { %v1324_v23 = vsub.f32 %v1316_v2, %v1323_v22 }
 0x31e   : > { %v2149_v24 = vpop.eup %2148 }
 0x31f   : > { %v1325_v25 = vmul.f32 1.442695, %v1324_v23  ;;  %v1104_v26 = vsel %vm938_vm3, %v2149_v24, 0.0  ;;  %v1107_v27 = vpack.c.bf16 %v2149_v24, %v2149_v24 }
 0x320   : > { %1105 = vadd.xlane.f32.xlu1 %v1104_v26  ;;  %v1222_v28 = vpop.permute.xlu0 %1221 }
 0x321   : > { %2152 = vpow2.f32 %v1325_v25  ;;  %v1227_v29 = vsel %vm998_vm4, %v1222_v28, 0  ;;  %1972 = vmatmul.mubr.msk.bf16.vlgmr.msra.gmra.mxu0 %vm938_vm3, %v1107_v27  ;;  %v2140_v27 = vld [vmem:[#allocation10 + $0x8] sm:$0xff]   ;;  %v2141_v28 = vld [vmem:[#allocation10] sm:$0xff]  }
 0x322   : > { %1982 = vmatpush3.bf16.msra.mxu0 %v1227_v29  ;;  %1983 = vmatprep.mubr.msk.bf16.mxu0 %vm2371_vm0, %v2370_v0 }
 0x323   : > { %1993 = vmatprep.subr.bf16.mxu0 %v2370_v0 }
 0x324   : > { %992 = vadd.xlane.f32.xlu1 %v991_v30 }
 0x326   : > { %v2151_v31 = vpop.eup %2150 }
 0x327   : > { %v1217_v33 = vsel %vm938_vm3, %v2151_v31, 0.0  ;;  %v1220_v34 = vpack.c.bf16 %v2151_v31, %v2151_v31 }
 0x328   : > { %1218 = vadd.xlane.f32.xlu0 %v1217_v33 }
 0x329   : > { %1984 = vmatmul.mubr.msk.bf16.vlgmr.msra.gmra.mxu0 %vm938_vm3, %v1220_v34  ;;  %v1874_v34 = vld [vmem:[%s2845_s12] ss:$0 sm:$0xff] }
 0x32a   : > { %1994 = vmatpush3.bf16.msra.mxu0 %v1337_v35  ;;  %1995 = vmatprep.mubr.msk.bf16.mxu0 %vm2371_vm0, %v2370_v0 }
 0x32b   : > { %2007 = vmatprep.subr.bf16.mxu0 %v2370_v0 }
 0x32e   : > { %v2153_v36 = vpop.eup %2152 }
 0x32f   : > { %v1327_v37 = vsel %vm938_vm3, %v2153_v36, 0.0  ;;  %v1330_v38 = vpack.c.bf16 %v2153_v36, %v2153_v36 }
 0x330   : > { %1328 = vadd.xlane.f32.xlu0 %v1327_v37 }
 0x331   : > { %1996 = vmatmul.mubr.msk.bf16.vlgmr.msra.gmra.mxu0 %vm938_vm3, %v1330_v38  ;;  %v2142_v38 = vld [vmem:[%s2848_s15 + $0x18] sm:$0xff]  }
 0x332   : > { %2011 = vmatprep.mubr.msk.bf16.mxu0 %vm2371_vm0, %v2370_v0  ;;  %2008 = vmatpush3.bf16.msra.mxu0 %v2140_v27 }
 0x333   : > { %2009 = vmatprep.subr.bf16.mxu0 %v2370_v0 }
 0x336   : > { %2010 = vmatpush3.bf16.msra.mxu0 %v2141_v28 }
 0x36c   : > { %v1036_v39 = vpop.f32.mrf.mxu0 }
 0x36e   : > { %v1961_v40 = vpop.f32.mrf.mxu0 }
 0x36f   : > { %v2144_v40 = vld [vmem:[%s2848_s15 + $0x8] sm:$0xff]  }
 0x370   : > { %v1039_v41 = vpop.f32.mrf.mxu0 }
 0x371   : > { %v2145_v41 = vld [vmem:[%s2848_s15] sm:$0xff]  }
 0x372   : > { %v1962_v42 = vpop.f32.mrf.mxu0 }
 0x373   : > { %v1875_v42 = vld [vmem:[%s2900_s24] ss:$0 sm:$0xff] }
 0x3a9   : > { %v1106_v43 = vpop.xlane.xlu1 %1105 }
 0x3aa   : > { %2154 = vrcp.f32 %v1106_v43 }
 0x3ad   : > { %v993_v3 = vpop.xlane.xlu1 %992 }
 0x3b1   : > { %v1219_v44 = vpop.xlane.xlu0 %1218 }
 0x3b2   : > { %2156 = vrcp.f32 %v1219_v44 }
 0x3b7   : > { %v2155_v46 = vpop.eup %2154 }
 0x3b9   : > { %v1329_v47 = vpop.xlane.xlu0 %1328 }
 0x3ba   : > { %2158 = vrcp.f32 %v1329_v47 }
 0x3bb   : > { %2160 = vrcp.f32 %v993_v3 }
 0x3bf   : > { %v2157_v54 = vpop.eup %2156 }
 0x3c7   : > { %v2159_v60 = vpop.eup %2158 }
 0x3c8   : > { %v2161_v4 = vpop.eup %2160 }
 0x3c9   : > { %v1043_v8 = vmul.f32 %v2161_v4, %v1036_v39  ;;  %v2143_v39 = vld [vmem:[%s2848_s15 + $0x10] sm:$0xff]  }
 0x3e1   : > { %v1153_v48 = vpop.f32.mrf.mxu0 }
 0x3e2   : > { %v1160_v49 = vmul.f32 %v2155_v46, %v1153_v48 }
 0x3e3   : > { %v1973_v50 = vpop.f32.mrf.mxu0 }
 0x3e4   : > { %1382 = vrot.lane.b32.xlu0 %v1160_v49, %s2375_s9  ;;  %s2904_s9 = sld [smem:[#allocation32_spill]] }
 0x3e5   : > { %v1156_v51 = vpop.f32.mrf.mxu0 }
 0x3e7   : > { %v1974_v53 = vpop.f32.mrf.mxu0 }
 0x3e8   : > { %v1879_v53 = vld [vmem:[%s2901_s26] ss:$0 sm:$0xff] }
 0x3e9   : > { %v1263_v55 = vpop.f32.mrf.mxu0 }
 0x3ea   : > { %v1270_v56 = vmul.f32 %v2157_v54, %v1263_v55 }
 0x3eb   : > { %v1985_v57 = vpop.f32.mrf.mxu0 }
 0x3ec   : > { %1386 = vrot.lane.b32.xlu1 %v1270_v56, %s2376_s19  ;;  %s1888_s19 = sshll.u32 %s2354_s21, 7 }
 0x3ed   : > { %v1266_v58 = vpop.f32.mrf.mxu0  ;;  %s1696_s26 = scalar_lea.hbm %s2905_s27, %s1888_s19 }
 0x3ef   : > { %v1986_v59 = vpop.f32.mrf.mxu0 }
 0x3f1   : > { %v1373_v61 = vpop.f32.mrf.mxu0 }
 0x3f2   : > { %v1380_v62 = vmul.f32 %v2159_v60, %v1373_v61 }
 0x3f3   : > { %v1997_v63 = vpop.f32.mrf.mxu0 }
 0x3f4   : > { %1390 = vrot.lane.b32.xlu1 %v1380_v62, %s2377_s17  ;;  %s707_s17 = scalar_lea.vmem [#allocation12], %s1844_s2 }
 0x3f5   : > { %v1376_v1 = vpop.f32.mrf.mxu0  ;;  %s1698_s13 = sshll.u32 %s707_s17, 4  ;;  %s1699_s13 = int_to_ptr.vmem [resolvable:$true] %s1698_s13 }
 0x3f6   : > { %s2274_s25 = scalar_lea.vmem %s1699_s13, 128 }
 0x3f7   : > { %v1998_v2 = vpop.f32.mrf.mxu0  ;;  %p2275_p2 = scmp.ne.s32.totalorder %s1699_s13, %s2274_s25 }
 0x3f9   : > { %p2276_p11 = pnand %p2275_p2, %p2579_p0 }
 0x3fb   : > { %p2277_p7 = pneg %p2276_p11 }
 0x456   : > { %v1383_v5 = vpop.permute.xlu0 %1382 }
 0x457   : > { %v1393_v9 = vsel %vm938_vm3, %v1043_v8, %v1383_v5  ;;  %v1885_v8 = vld [vmem:[%s2903_s14] ss:$0 sm:$0xff]  ;;  %s2278_s14 = sshll.u32 %s2378_s18, 4  ;;  %s2279_s14 = int_to_ptr.vmem [resolvable:$false] %s2278_s14 }
 0x458   : > { %s2280_s21 = scalar_lea.vmem %s2279_s14, 256  ;;  %p2281_p6 = scmp.lt.s32.totalorder %s1699_s13, %s2279_s14 }
 0x459   : > { %p2282_p9 = scmp.lt.s32.totalorder %s2280_s21, %s2274_s25 }
 0x45b   : > { %p2283_p13 = por %p2282_p9, %p2281_p6 }
 0x45d   : > { %p2284_p1 = pnand %p2283_p13, %p2277_p7 }
 0x45e   : > { %v1387_v7 = vpop.permute.xlu1 %1386 }
 0x45f   : > { %v1395_v10 = vsel %vm1394_vm5, %v1393_v9, %v1387_v7 }
 0x466   : > { %v1391_v11 = vpop.permute.xlu1 %1390 }
 0x467   : > { %v1397_v12 = vsel %vm1396_vm6, %v1395_v10, %v1391_v11  ;;  %v1886_v10 = vld [vmem:[%s2904_s9] ss:$0 sm:$0xff] }
 0x468   : > { %v1398_v13 = vpack.c.bf16 %v1397_v12, %v1397_v12 }
 0x46a   : > { %2004 = vmatmul.mubr.msk.bf16.vlgmr.msra.gmra.mxu1 %vm748_vm1, %v1398_v13 }
 0x46b   : > { %2023 = vmatprep.mubr.msk.bf16.mxu1 %vm2371_vm0, %v2370_v0  ;;  %2016 = vmatpush3.bf16.msra.mxu1 %v2142_v38 }
 0x46c   : > { %2017 = vmatprep.subr.bf16.mxu1 %v2370_v0 }
 0x46f   : > { %2018 = vmatpush3.bf16.msra.mxu1 %v2143_v39 }
 0x470   : > { %2019 = vmatprep.subr.bf16.mxu1 %v2370_v0 }
 0x473   : > { %2020 = vmatpush3.bf16.msra.mxu1 %v2144_v40 }
 0x474   : > { %2021 = vmatprep.subr.bf16.mxu1 %v2370_v0 }
 0x477   : > { %2022 = vmatpush3.bf16.msra.mxu1 %v2145_v41 }
 0x52a   : > { %v1459_v15 = vpop.f32.mrf.mxu1 }
 0x52b   : > { %v1460_v16 = vadd.f32 %v1869_v14, %v1459_v15 }
 0x52c   : > { %v2005_v17 = vpop.f32.mrf.mxu1 }
 0x52d   : > { %v1465_v18 = vadd.f32 %v1460_v16, %v2653_v6 }
 0x52e   : > { %v1462_v19 = vpop.f32.mrf.mxu1 }
 0x52f   : > { %v1466_v20 = vsel %vm748_vm1, %v1465_v18, 0.0 }
 0x530   : > { %1467 = vadd.xlane.f32.xlu0 %v1466_v20  ;;  %v2006_v21 = vpop.f32.mrf.mxu1 }
 0x5b9   : > { %v1468_v22 = vpop.xlane.xlu0 %1467 }
 0x5ba   : > { %v1470_v23 = vmul.f32 0.03125, %v1468_v22 }
 0x5bc   : > { %v1471_v24 = vsub.f32 %v1465_v18, %v1470_v23 }
 0x5be   : > { %v1472_v25 = vmul.f32 %v1471_v24, %v1471_v24 }
 0x5c0   : > { %v1473_v26 = vsel %vm748_vm1, %v1472_v25, 0.0 }
 0x5c1   : > { %1474 = vadd.xlane.f32.xlu1 %v1473_v26 }
 0x64a   : > { %v1475_v29 = vpop.xlane.xlu1 %1474 }
 0x64b   : > { %v1476_v6 = vmul.f32 0.03125, %v1475_v29 }
 0x64d   : > { %v1477_v30 = vadd.f32 1e-05, %v1476_v6 }
 0x64f   : > { %2162 = vrsqrt.f32 %v1477_v30 }
 0x65c   : > { %v2163_v31 = vpop.eup %2162 }
 0x65d   : > { %v1479_v33 = vmul.f32 %v2163_v31, %v1471_v24 }
 0x65f   : > { %v1487_v35 = vmul.f32 %v1873_v32, %v1479_v33 }
 0x661   : > { %v1495_v36 = vadd.f32 %v1874_v34, %v1487_v35 }
 0x663   : > { %v1496_v37 = vpack.c.bf16 %v1495_v36, %v1495_v36 }
 0x665   : > { %2012 = vmatmul.mubr.msk.bf16.vlgmr.msra.gmra.mxu0 %vm748_vm1, %v1496_v37 }
 0x725   : > { %v1557_v43 = vpop.f32.mrf.mxu0 }
 0x726   : > { %v1558_v44 = vadd.f32 %v1875_v42, %v1557_v43 }
 0x727   : > { %v2013_v45 = vpop.f32.mrf.mxu0 }
 0x728   : > { %v1564_v46 = vmul.f32 0.70710677, %v1558_v44  ;;  %v1563_v50 = vmul.f32 0.5, %v1558_v44 }
 0x729   : > { %v1560_v47 = vpop.f32.mrf.mxu0 }
 0x72a   : > { %2164 = verf.f32 %v1564_v46 }
 0x72b   : > { %v2014_v48 = vpop.f32.mrf.mxu0 }
 0x737   : > { %v2165_v49 = vpop.eup %2164 }
 0x738   : > { %v1566_v51 = vadd.f32 1.0, %v2165_v49 }
 0x73a   : > { %v1567_v0 = vmul.f32 %v1566_v51, %v1563_v50 }
 0x73c   : > { %v1568_v52 = vpack.c.bf16 %v1567_v0, %v1567_v0 }
 0x73e   : > { %2024 = vmatmul.mubr.msk.bf16.vlgmr.msra.gmra.mxu1 %vm1608_vm7, %v1568_v52 }
 0x7fe   : > { %v1646_v54 = vpop.f32.mrf.mxu1 }
 0x7ff   : > { %v1647_v55 = vadd.f32 %v1879_v53, %v1646_v54 }
 0x800   : > { %v2025_v56 = vpop.f32.mrf.mxu1 }
 0x801   : > { %v1652_v57 = vadd.f32 %v1647_v55, %v1495_v36 }
 0x802   : > { %v1649_v58 = vpop.f32.mrf.mxu1 }
 0x803   : > { %v1653_v59 = vsel %vm748_vm1, %v1652_v57, 0.0 }
 0x804   : > { %1654 = vadd.xlane.f32.xlu0 %v1653_v59  ;;  %v2026_v60 = vpop.f32.mrf.mxu1 }
 0x88d   : > { %v1655_v61 = vpop.xlane.xlu0 %1654 }
 0x88e   : > { %v1656_v62 = vmul.f32 0.03125, %v1655_v61 }
 0x890   : > { %v1657_v63 = vsub.f32 %v1652_v57, %v1656_v62 }
 0x892   : > { %v1658_v1 = vmul.f32 %v1657_v63, %v1657_v63 }
 0x894   : > { %v1659_v2 = vsel %vm748_vm1, %v1658_v1, 0.0 }
 0x895   : > { %1660 = vadd.xlane.f32.xlu0 %v1659_v2 }
 0x91e   : > { %v1661_v3 = vpop.xlane.xlu0 %1660 }
 0x91f   : > { %v1662_v4 = vmul.f32 0.03125, %v1661_v3 }
 0x921   : > { %v1663_v5 = vadd.f32 1e-05, %v1662_v4 }
 0x923   : > { %2166 = vrsqrt.f32 %v1663_v5 }
 0x930   : > { %v2167_v7 = vpop.eup %2166 }
 0x931   : > { %v1665_v9 = vmul.f32 %v2167_v7, %v1657_v63 }
 0x933   : > { %v1673_v11 = vmul.f32 %v1885_v8, %v1665_v9 }
 0x935   : > { %v1681_v12 = vadd.f32 %v1886_v10, %v1673_v11 }
 0x937   : > { %1682 = vst.msk [vmem:[%s707_s17] sm:$0xff] %vm748_vm1, %v1681_v12 }
 0x938   : > { %2287 = shalt.err (!%p2284_p1)
}
 0x939   : > { %s2288_s2 = scalar_lea.hbm %s1696_s26, 128  ;;  %s2292_s0 = scalar_lea.hbm %s2905_s27, 256 }
 0x93a   : > { %p2289_p4 = scmp.ne.s32.totalorder %s1696_s26, %s2288_s2  ;;  %p2293_p5 = scmp.lt.s32.totalorder %s1696_s26, %s2905_s27 }
 0x93b   : > { %p2294_p3 = scmp.lt.s32.totalorder %s2292_s0, %s2288_s2 }
 0x93c   : > { %p2290_p8 = pnand %p2289_p4, %p2579_p0 }
 0x93d   : > { %p2295_p10 = por %p2294_p3, %p2293_p5 }
 0x93e   : > { %p2291_p12 = pneg %p2290_p8 }
 0x940   : > { %p2296_p2 = pnand %p2295_p10, %p2291_p12 }
 0x942   : > { %2299 = shalt.err (!%p2296_p2)
}
 0x943   : > { %2041 = dma.vmem_to_hbm [thread:$0]  (%p2579_p0), %s1699_s13, 128, %s1696_s26, %s1684_s4  }
 0x944 PF: > { %s2906_s17 = sld [smem:[#allocation17_spill]]  ;;  %p2909_p7 = scmp.ge.s32.totalorder %s2362_s22, 2 }
 0x945   : > { %s2907_s24 = sld [smem:[#allocation18_spill]] }
 0x94a   : > { %s1710_s3 = sand.u32 1, %s2906_s17  }
 0x94b   : > { %p2908_p11 = scmp.ne.s32.totalorder %s2907_s24, 0  ;;  %s1711_s25 = scalar_lea.sflag [#allocation6], %s1710_s3 }
 0x94d   : > { %p2058_p6 = pnand %p2909_p7, %p2908_p11 }
 0x94f   : > { %p2059_p9 = pneg %p2058_p6 }
 0x951   : > { %2337 = dma.done.wait (%p2059_p9), %s1711_s25, 128  }
 0x952   : > { %2339 = vsyncadd (%p2059_p9), %s1711_s25, 4294967168  ;;  %s37_s22 = sadd.s32 1, %s2362_s22   ;;  %s2910_s4 = sld [smem:[#allocation20_spill]] }
 0x953   : > { %p34_p13 = scmp.ge.s32.totalorder %s37_s22, 4   ;;  %s2911_s0 = smov %s2346_s30 }
 0x954   : > { %s2912_s30 = smov %s2350_s20  ;;  %s2913_s20 = smov %s2591_s23 }
 0x955   : > { %s2914_s21 = smov %s2358_s1  ;;  %36 = sbr.rel (!%p34_p13) target bundleno = 22 (0x16), region = 163 }
 0x958   : > { %s2915_s1 = smov %s2910_s4 }
 0x95a   :  { %1716 = vsyncpa [#allocation5], 1 }
 0x95b   :  { %1718 = vsyncpa [#allocation5 + $0x1], 1 }
 0x95c   :  { %1719 = vsyncpa [#allocation8], 1 }
 0x95d   :  { %1720 = vsyncpa [#allocation11], 1 }
 0x95e   :  { %1721 = vsyncpa [#allocation6], 1 }
 0x95f   :  { %1723 = vsyncpa [#allocation6 + $0x1], 1 }

</bundles_post_ra>
